<compile_context>
chip_gen: v7x
topology: tpu7x:2x2x1
jax: 0.10.0
libtpu: 0.0.40
codegen_flags: <defaults>
</compile_context>

<pallas_src>
import functools
import math

import jax
import jax.numpy as jnp
from jax.experimental import pallas as pl
from jax.experimental.pallas import tpu as pltpu


def _round_up(x, m):
    return ((x + m - 1) // m) * m


def _pick_time_chunk(t, cap=32):
    """Largest divisor of t not exceeding cap (whole sequence if t <= cap)."""
    if t <= cap:
        return t
    for tc in range(cap, 0, -1):
        if t % tc == 0:
            return tc
    return 1


def _rnn_chunk_kernel(x_ref, wx_ref, whh_ref, who_ref, b_ref, h0_ref,
                      out_ref, hid_ref, h_carry, xc_buf, h_hist,
                      *, o_pad, tc, bt):
    c = pl.program_id(1)

    @pl.when(c == 0)
    def _():
        h_carry[...] = h0_ref[...]

    n_in = x_ref.shape[-1]

    # Phase 1: chunk-wide x-contribution + bias (one big MXU matmul, M = Tc*B).
    x_flat = x_ref[...].reshape(tc * bt, n_in)
    xc_buf[...] = (jnp.dot(x_flat, wx_ref[...],
                           preferred_element_type=jnp.float32)
                   + b_ref[...])                         # (Tc*B, o_pad + h_pad)

    # Phase 2: latency-bound recurrence, one tiny (B,128)@(128,128) per step.
    h_prev = h_carry[...]                                # (B, h_pad), lane-dense
    for t in range(tc):                                  # tc static -> unrolled
        lo, hi = t * bt, (t + 1) * bt
        h_hist[lo:hi, :] = h_prev                        # state entering step t
        h_prev = (xc_buf[lo:hi, o_pad:]
                  + jnp.dot(h_prev, whh_ref[...],
                            preferred_element_type=jnp.float32))
    h_carry[...] = h_prev

    # Phase 3: batched hidden->logits contribution + one dense log_softmax.
    logits = (xc_buf[:, :o_pad]
              + jnp.dot(h_hist[...], who_ref[...],
                        preferred_element_type=jnp.float32))  # (Tc*B, o_pad)
    m = jnp.max(logits, axis=1, keepdims=True)
    shifted = logits - m
    lse = jnp.log(jnp.sum(jnp.exp(shifted), axis=1, keepdims=True))
    out_ref[...] = (shifted - lse).reshape(tc, bt, o_pad).astype(out_ref.dtype)

    @pl.when(c == pl.num_programs(1) - 1)
    def _():
        hid_ref[...] = h_prev.astype(hid_ref.dtype)


def _pack_params(params, input_size, o_pad, h_pad):
    """Fuse [output_layer | hidden_layer] along N, pad O->o_pad / H->h_pad, split K."""
    wh_t, bh, wo_t, bo = params
    K, H = wh_t.shape
    O = wo_t.shape[1]
    n_cat = o_pad + h_pad
    w_cat = jnp.zeros((K, n_cat), jnp.float32)
    w_cat = w_cat.at[:, :O].set(wo_t)
    w_cat = w_cat.at[:, o_pad:o_pad + H].set(wh_t)
    b_cat = jnp.zeros((n_cat,), jnp.float32)
    b_cat = b_cat.at[:O].set(bo)
    b_cat = b_cat.at[O:o_pad].set(-1e30)        # padded logit lanes never win (f32!)
    b_cat = b_cat.at[o_pad:o_pad + H].set(bh)   # padded hidden lanes stay 0
    wx = w_cat[:input_size]                                          # (I, n_cat)
    wh = jnp.zeros((h_pad, n_cat), jnp.float32).at[:H].set(w_cat[input_size:])
    whh = wh[:, o_pad:]                         # (h_pad, h_pad)  feeds h_new
    who = wh[:, :o_pad]                         # (h_pad, o_pad)  feeds logits
    return wx, whh, who, b_cat.reshape(1, n_cat)


def rnn_forward_sequence(xs, hidden0, params, layer_cnt, *,
                         batch_block=None, time_chunk=None):
    """xs: (T, B, I); hidden0: (B, H). Returns (log_probs (T, B, O), hidden (B, H))."""
    if layer_cnt < 1:
        # TODO(synk): layer_cnt == 0 would return the incoming hidden unchanged;
        # the kernel assumes >= 1 application (idempotent for any layer_cnt >= 1).
        raise ValueError("layer_cnt must be >= 1")

    wh_t, bh, wo_t, bo = params
    T, B, I = xs.shape
    H = wh_t.shape[1]
    O = wo_t.shape[1]
    o_pad = _round_up(O, 128)
    h_pad = _round_up(H, 128)
    n_cat = o_pad + h_pad

    # Pad batch to a sublane multiple so all reshapes/slices stay tile-aligned.
    bp = _round_up(B, 8)
    if bp != B:
        xs = jnp.pad(xs, ((0, 0), (0, bp - B), (0, 0)))
        hidden0 = jnp.pad(hidden0, ((0, bp - B), (0, 0)))
    h0_pad = jnp.pad(hidden0.astype(jnp.float32), ((0, 0), (0, h_pad - H)))

    if batch_block is None:
        # nb = 1 on v5e/v6e; pass batch_block = bp // 2 on v7x (bp >= 16) to
        # shard the "parallel" axis across its two TensorCores.
        batch_block = bp
    assert bp % batch_block == 0 and batch_block % 8 == 0
    nb = bp // batch_block

    tc = time_chunk if time_chunk is not None else _pick_time_chunk(T)
    assert T % tc == 0
    n_chunks = T // tc

    wx, whh, who, b_cat = _pack_params(params, I, o_pad, h_pad)
    kernel = functools.partial(_rnn_chunk_kernel, o_pad=o_pad, tc=tc,
                               bt=batch_block)

    # VMEM budget: default-double-buffered blocks + scratch, with headroom.
    # (Weight blocks have constant index_maps; they are DMA'd once regardless.)
    block_bytes = 4 * (
        2 * (tc * batch_block * I)
        + 2 * (tc * batch_block * o_pad)
        + 2 * (I * n_cat + h_pad * h_pad + h_pad * o_pad + n_cat)
        + 2 * 2 * (batch_block * h_pad)
        + (batch_block * h_pad + tc * batch_block * n_cat
           + tc * batch_block * h_pad))
    vmem_limit = int(min(max(2 * block_bytes, 32 << 20), 48 << 20))

    cost = pl.CostEstimate(
        flops=2 * T * bp * (I + h_pad) * n_cat,
        transcendentals=T * bp * (o_pad + 1),
        bytes_accessed=4 * (xs.size + T * bp * o_pad + (I + h_pad) * n_cat
                            + n_cat + 2 * bp * h_pad),
    )

    out_pad, hid_pad = pl.pallas_call(
        kernel,
        out_shape=(
            jax.ShapeDtypeStruct((T, bp, o_pad), jnp.float32),
            jax.ShapeDtypeStruct((bp, h_pad), jnp.float32),
        ),
        grid_spec=pltpu.PrefetchScalarGridSpec(
            num_scalar_prefetch=0,
            grid=(nb, n_chunks),
            in_specs=[
                pl.BlockSpec((tc, batch_block, I), lambda b, c: (c, b, 0)),
                pl.BlockSpec((I, n_cat), lambda b, c: (0, 0)),      # resident wx
                pl.BlockSpec((h_pad, h_pad), lambda b, c: (0, 0)),  # resident whh
                pl.BlockSpec((h_pad, o_pad), lambda b, c: (0, 0)),  # resident who
                pl.BlockSpec((1, n_cat), lambda b, c: (0, 0)),      # resident bias
                pl.BlockSpec((batch_block, h_pad), lambda b, c: (b, 0)),
            ],
            out_specs=(
                pl.BlockSpec((tc, batch_block, o_pad), lambda b, c: (c, b, 0)),
                pl.BlockSpec((batch_block, h_pad), lambda b, c: (b, 0)),
            ),
            scratch_shapes=[
                pltpu.VMEM((batch_block, h_pad), jnp.float32),       # h carry
                pltpu.VMEM((tc * batch_block, n_cat), jnp.float32),  # x@W + b
                pltpu.VMEM((tc * batch_block, h_pad), jnp.float32),  # h history
            ],
        ),
        compiler_params=pltpu.CompilerParams(
            dimension_semantics=("parallel", "arbitrary"),
            vmem_limit_bytes=vmem_limit),
        cost_estimate=cost,
    )(xs.astype(jnp.float32), wx, whh, who, b_cat, h0_pad)

    return out_pad[:, :B, :O], hid_pad[:B, :H]


def rnn_forward(x, hidden, params, layer_cnt):
    """Single-step forward matching the PyTorch module exactly."""
    out, hid = rnn_forward_sequence(x[None], hidden, params, layer_cnt)
    return out[0], hid


def init_params(key, input_size, hidden_size, output_size):
    """PyTorch-Linear-style init: U(-1/sqrt(fan_in), 1/sqrt(fan_in)), pre-transposed."""
    fan_in = input_size + hidden_size
    bound = 1.0 / math.sqrt(fan_in)
    k1, k2, k3, k4 = jax.random.split(key, 4)
    wh_t = jax.random.uniform(k1, (fan_in, hidden_size), jnp.float32, -bound, bound)
    bh = jax.random.uniform(k2, (hidden_size,), jnp.float32, -bound, bound)
    wo_t = jax.random.uniform(k3, (fan_in, output_size), jnp.float32, -bound, bound)
    bo = jax.random.uniform(k4, (output_size,), jnp.float32, -bound, bound)
    return wh_t, bh, wo_t, bo


if __name__ == "__main__":
    layer_cnt = 3
    input_size = 16
    hidden_size = 32
    output_size = 10
    batch = 8
    seq_len = 12

    key = jax.random.PRNGKey(0)
    kp, kx, kh = jax.random.split(key, 3)

    params = init_params(kp, input_size, hidden_size, output_size)
    xs = jax.random.normal(kx, (seq_len, batch, input_size), jnp.float32)
    hidden0 = jnp.zeros((batch, hidden_size), jnp.float32)   # initHidden()

    # Fused, time-chunked sequence kernel (whole sequence in one chunk here).
    fwd = jax.jit(functools.partial(rnn_forward_sequence, layer_cnt=layer_cnt))
    log_probs, hid_final = fwd(xs, hidden0, params)
    jax.block_until_ready((log_probs, hid_final))

    # Plain-JAX reference: PyTorch forward applied step-by-step.
    wh_t, bh, wo_t, bo = params
    h = hidden0
    ref_outs = []
    for t in range(seq_len):
        combined = jnp.concatenate([xs[t], h], axis=1)
        for _ in range(layer_cnt):
            h_new = combined @ wh_t + bh          # idempotent: same combined
        h = h_new
        ref_outs.append(jax.nn.log_softmax(combined @ wo_t + bo, axis=1))
    ref_outs = jnp.stack(ref_outs)
    assert jnp.allclose(log_probs, ref_outs, atol=1e-4, rtol=1e-4)
    assert jnp.allclose(hid_final, h, atol=1e-4, rtol=1e-4)

    # Single-step forward, exactly the module's forward(input, hidden).
    step = jax.jit(functools.partial(rnn_forward, layer_cnt=layer_cnt))
    out1, h1 = step(xs[0], hidden0, params)
    jax.block_until_ready((out1, h1))
    comb0 = jnp.concatenate([xs[0], hidden0], axis=1)
    assert jnp.allclose(out1, jax.nn.log_softmax(comb0 @ wo_t + bo, axis=1),
                        atol=1e-4, rtol=1e-4)
    assert jnp.allclose(h1, comb0 @ wh_t + bh, atol=1e-4, rtol=1e-4)

    print("KERNEL_OK")
</pallas_src>

<mosaic_0001>
module attributes {stable_mosaic.version = 11 : i64} {
  func.func @_rnn_chunk_kernel(%arg0: i32, %arg1: i32, %arg2: memref<12x8x16xf32, #tpu.memory_space<vmem>>, %arg3: memref<16x256xf32, #tpu.memory_space<vmem>>, %arg4: memref<128x128xf32, #tpu.memory_space<vmem>>, %arg5: memref<128x128xf32, #tpu.memory_space<vmem>>, %arg6: memref<1x256xf32, #tpu.memory_space<vmem>>, %arg7: memref<8x128xf32, #tpu.memory_space<vmem>>, %arg8: memref<12x8x128xf32, #tpu.memory_space<vmem>>, %arg9: memref<8x128xf32, #tpu.memory_space<vmem>>, %arg10: memref<8x128xf32, #tpu.memory_space<vmem>>, %arg11: memref<96x256xf32, #tpu.memory_space<vmem>>, %arg12: memref<96x128xf32, #tpu.memory_space<vmem>>) attributes {dimension_semantics = [#tpu.dimension_semantics<parallel>, #tpu.dimension_semantics<arbitrary>], iteration_bounds = array<i64: 1, 1>, scalar_prefetch = 0 : i64, scratch_operands = 3 : i64, tpu.core_type = #tpu.core_type<tc>, window_params = [{transform_indices = @transform_0, window_bounds = array<i64: 12, 8, 16>}, {pipeline_mode = #tpu.pipeline_mode<synchronous>, transform_indices = @transform_1, window_bounds = array<i64: 16, 256>}, {pipeline_mode = #tpu.pipeline_mode<synchronous>, transform_indices = @transform_2, window_bounds = array<i64: 128, 128>}, {pipeline_mode = #tpu.pipeline_mode<synchronous>, transform_indices = @transform_3, window_bounds = array<i64: 128, 128>}, {pipeline_mode = #tpu.pipeline_mode<synchronous>, transform_indices = @transform_4, window_bounds = array<i64: 1, 256>}, {transform_indices = @transform_5, window_bounds = array<i64: 8, 128>}, {transform_indices = @transform_6, window_bounds = array<i64: 12, 8, 128>}, {transform_indices = @transform_7, window_bounds = array<i64: 8, 128>}]} {
    %c0_i32 = arith.constant 0 : i32
    %0 = arith.cmpi eq, %arg1, %c0_i32 : i32
    %1 = arith.extui %0 : i1 to i32
    %c0_i32_0 = arith.constant 0 : i32
    %2 = arith.cmpi ne, %1, %c0_i32_0 : i32
    scf.if %2 {
      %c0_99 = arith.constant 0 : index
      %c0_100 = arith.constant 0 : index
      %93 = vector.load %arg7[%c0_99, %c0_100] : memref<8x128xf32, #tpu.memory_space<vmem>>, vector<8x128xf32>
      %c0_101 = arith.constant 0 : index
      %c0_102 = arith.constant 0 : index
      %94 = vector.load %arg10[%c0_101, %c0_102] : memref<8x128xf32, #tpu.memory_space<vmem>>, vector<8x128xf32>
      tpu.vector_store %arg10[%c0_101, %c0_102], %93 {strides = array<i32>} : memref<8x128xf32, #tpu.memory_space<vmem>>, vector<8x128xf32>,
    } else {
    }
    %c0 = arith.constant 0 : index
    %c0_1 = arith.constant 0 : index
    %c0_2 = arith.constant 0 : index
    %3 = vector.load %arg2[%c0, %c0_1, %c0_2] : memref<12x8x16xf32, #tpu.memory_space<vmem>>, vector<12x8x16xf32>
    %4 = vector.shape_cast %3 : vector<12x8x16xf32> to vector<96x16xf32>
    %c0_3 = arith.constant 0 : index
    %c0_4 = arith.constant 0 : index
    %5 = vector.load %arg3[%c0_3, %c0_4] : memref<16x256xf32, #tpu.memory_space<vmem>>, vector<16x256xf32>
    %cst = arith.constant dense<0.000000e+00> : vector<96x256xf32>
    %6 = tpu.matmul %4, %5, %cst {dimension_numbers = #tpu.dot_dimension_numbers<[1], [0], [0], [1], [0, 0, 1, 1], [], []>} : vector<96x16xf32>, vector<16x256xf32>, vector<96x256xf32> -> vector<96x256xf32>
    %c0_5 = arith.constant 0 : index
    %c0_6 = arith.constant 0 : index
    %7 = vector.load %arg6[%c0_5, %c0_6] : memref<1x256xf32, #tpu.memory_space<vmem>>, vector<1x256xf32>
    %8 = vector.broadcast %7 : vector<1x256xf32> to vector<96x256xf32>
    %9 = arith.addf %6, %8 : vector<96x256xf32>
    %c0_7 = arith.constant 0 : index
    %c0_8 = arith.constant 0 : index
    %10 = vector.load %arg11[%c0_7, %c0_8] : memref<96x256xf32, #tpu.memory_space<vmem>>, vector<96x256xf32>
    tpu.vector_store %arg11[%c0_7, %c0_8], %9 {strides = array<i32>} : memref<96x256xf32, #tpu.memory_space<vmem>>, vector<96x256xf32>,
    %c0_9 = arith.constant 0 : index
    %c0_10 = arith.constant 0 : index
    %11 = vector.load %arg10[%c0_9, %c0_10] : memref<8x128xf32, #tpu.memory_space<vmem>>, vector<8x128xf32>
    %c0_11 = arith.constant 0 : index
    %c0_12 = arith.constant 0 : index
    %12 = vector.load %arg12[%c0_11, %c0_12] : memref<96x128xf32, #tpu.memory_space<vmem>>, vector<8x128xf32>
    tpu.vector_store %arg12[%c0_11, %c0_12], %11 {strides = array<i32>} : memref<96x128xf32, #tpu.memory_space<vmem>>, vector<8x128xf32>,
    %c0_13 = arith.constant 0 : index
    %c128 = arith.constant 128 : index
    %13 = vector.load %arg11[%c0_13, %c128] : memref<96x256xf32, #tpu.memory_space<vmem>>, vector<8x128xf32>
    %c0_14 = arith.constant 0 : index
    %c0_15 = arith.constant 0 : index
    %14 = vector.load %arg4[%c0_14, %c0_15] : memref<128x128xf32, #tpu.memory_space<vmem>>, vector<128x128xf32>
    %cst_16 = arith.constant dense<0.000000e+00> : vector<8x128xf32>
    %15 = tpu.matmul %11, %14, %cst_16 {dimension_numbers = #tpu.dot_dimension_numbers<[1], [0], [0], [1], [0, 0, 1, 1], [], []>} : vector<8x128xf32>, vector<128x128xf32>, vector<8x128xf32> -> vector<8x128xf32>
    %16 = arith.addf %13, %15 : vector<8x128xf32>
    %c8 = arith.constant 8 : index
    %c0_17 = arith.constant 0 : index
    %17 = vector.load %arg12[%c8, %c0_17] : memref<96x128xf32, #tpu.memory_space<vmem>>, vector<8x128xf32>
    tpu.vector_store %arg12[%c8, %c0_17], %16 {strides = array<i32>} : memref<96x128xf32, #tpu.memory_space<vmem>>, vector<8x128xf32>,
    %c8_18 = arith.constant 8 : index
    %c128_19 = arith.constant 128 : index
    %18 = vector.load %arg11[%c8_18, %c128_19] : memref<96x256xf32, #tpu.memory_space<vmem>>, vector<8x128xf32>
    %c0_20 = arith.constant 0 : index
    %c0_21 = arith.constant 0 : index
    %19 = vector.load %arg4[%c0_20, %c0_21] : memref<128x128xf32, #tpu.memory_space<vmem>>, vector<128x128xf32>
    %cst_22 = arith.constant dense<0.000000e+00> : vector<8x128xf32>
    %20 = tpu.matmul %16, %19, %cst_22 {dimension_numbers = #tpu.dot_dimension_numbers<[1], [0], [0], [1], [0, 0, 1, 1], [], []>} : vector<8x128xf32>, vector<128x128xf32>, vector<8x128xf32> -> vector<8x128xf32>
    %21 = arith.addf %18, %20 : vector<8x128xf32>
    %c16 = arith.constant 16 : index
    %c0_23 = arith.constant 0 : index
    %22 = vector.load %arg12[%c16, %c0_23] : memref<96x128xf32, #tpu.memory_space<vmem>>, vector<8x128xf32>
    tpu.vector_store %arg12[%c16, %c0_23], %21 {strides = array<i32>} : memref<96x128xf32, #tpu.memory_space<vmem>>, vector<8x128xf32>,
    %c16_24 = arith.constant 16 : index
    %c128_25 = arith.constant 128 : index
    %23 = vector.load %arg11[%c16_24, %c128_25] : memref<96x256xf32, #tpu.memory_space<vmem>>, vector<8x128xf32>
    %c0_26 = arith.constant 0 : index
    %c0_27 = arith.constant 0 : index
    %24 = vector.load %arg4[%c0_26, %c0_27] : memref<128x128xf32, #tpu.memory_space<vmem>>, vector<128x128xf32>
    %cst_28 = arith.constant dense<0.000000e+00> : vector<8x128xf32>
    %25 = tpu.matmul %21, %24, %cst_28 {dimension_numbers = #tpu.dot_dimension_numbers<[1], [0], [0], [1], [0, 0, 1, 1], [], []>} : vector<8x128xf32>, vector<128x128xf32>, vector<8x128xf32> -> vector<8x128xf32>
    %26 = arith.addf %23, %25 : vector<8x128xf32>
    %c24 = arith.constant 24 : index
    %c0_29 = arith.constant 0 : index
    %27 = vector.load %arg12[%c24, %c0_29] : memref<96x128xf32, #tpu.memory_space<vmem>>, vector<8x128xf32>
    tpu.vector_store %arg12[%c24, %c0_29], %26 {strides = array<i32>} : memref<96x128xf32, #tpu.memory_space<vmem>>, vector<8x128xf32>,
    %c24_30 = arith.constant 24 : index
    %c128_31 = arith.constant 128 : index
    %28 = vector.load %arg11[%c24_30, %c128_31] : memref<96x256xf32, #tpu.memory_space<vmem>>, vector<8x128xf32>
    %c0_32 = arith.constant 0 : index
    %c0_33 = arith.constant 0 : index
    %29 = vector.load %arg4[%c0_32, %c0_33] : memref<128x128xf32, #tpu.memory_space<vmem>>, vector<128x128xf32>
    %cst_34 = arith.constant dense<0.000000e+00> : vector<8x128xf32>
    %30 = tpu.matmul %26, %29, %cst_34 {dimension_numbers = #tpu.dot_dimension_numbers<[1], [0], [0], [1], [0, 0, 1, 1], [], []>} : vector<8x128xf32>, vector<128x128xf32>, vector<8x128xf32> -> vector<8x128xf32>
    %31 = arith.addf %28, %30 : vector<8x128xf32>
    %c32 = arith.constant 32 : index
    %c0_35 = arith.constant 0 : index
    %32 = vector.load %arg12[%c32, %c0_35] : memref<96x128xf32, #tpu.memory_space<vmem>>, vector<8x128xf32>
    tpu.vector_store %arg12[%c32, %c0_35], %31 {strides = array<i32>} : memref<96x128xf32, #tpu.memory_space<vmem>>, vector<8x128xf32>,
    %c32_36 = arith.constant 32 : index
    %c128_37 = arith.constant 128 : index
    %33 = vector.load %arg11[%c32_36, %c128_37] : memref<96x256xf32, #tpu.memory_space<vmem>>, vector<8x128xf32>
    %c0_38 = arith.constant 0 : index
    %c0_39 = arith.constant 0 : index
    %34 = vector.load %arg4[%c0_38, %c0_39] : memref<128x128xf32, #tpu.memory_space<vmem>>, vector<128x128xf32>
    %cst_40 = arith.constant dense<0.000000e+00> : vector<8x128xf32>
    %35 = tpu.matmul %31, %34, %cst_40 {dimension_numbers = #tpu.dot_dimension_numbers<[1], [0], [0], [1], [0, 0, 1, 1], [], []>} : vector<8x128xf32>, vector<128x128xf32>, vector<8x128xf32> -> vector<8x128xf32>
    %36 = arith.addf %33, %35 : vector<8x128xf32>
    %c40 = arith.constant 40 : index
    %c0_41 = arith.constant 0 : index
    %37 = vector.load %arg12[%c40, %c0_41] : memref<96x128xf32, #tpu.memory_space<vmem>>, vector<8x128xf32>
    tpu.vector_store %arg12[%c40, %c0_41], %36 {strides = array<i32>} : memref<96x128xf32, #tpu.memory_space<vmem>>, vector<8x128xf32>,
    %c40_42 = arith.constant 40 : index
    %c128_43 = arith.constant 128 : index
    %38 = vector.load %arg11[%c40_42, %c128_43] : memref<96x256xf32, #tpu.memory_space<vmem>>, vector<8x128xf32>
    %c0_44 = arith.constant 0 : index
    %c0_45 = arith.constant 0 : index
    %39 = vector.load %arg4[%c0_44, %c0_45] : memref<128x128xf32, #tpu.memory_space<vmem>>, vector<128x128xf32>
    %cst_46 = arith.constant dense<0.000000e+00> : vector<8x128xf32>
    %40 = tpu.matmul %36, %39, %cst_46 {dimension_numbers = #tpu.dot_dimension_numbers<[1], [0], [0], [1], [0, 0, 1, 1], [], []>} : vector<8x128xf32>, vector<128x128xf32>, vector<8x128xf32> -> vector<8x128xf32>
    %41 = arith.addf %38, %40 : vector<8x128xf32>
    %c48 = arith.constant 48 : index
    %c0_47 = arith.constant 0 : index
    %42 = vector.load %arg12[%c48, %c0_47] : memref<96x128xf32, #tpu.memory_space<vmem>>, vector<8x128xf32>
    tpu.vector_store %arg12[%c48, %c0_47], %41 {strides = array<i32>} : memref<96x128xf32, #tpu.memory_space<vmem>>, vector<8x128xf32>,
    %c48_48 = arith.constant 48 : index
    %c128_49 = arith.constant 128 : index
    %43 = vector.load %arg11[%c48_48, %c128_49] : memref<96x256xf32, #tpu.memory_space<vmem>>, vector<8x128xf32>
    %c0_50 = arith.constant 0 : index
    %c0_51 = arith.constant 0 : index
    %44 = vector.load %arg4[%c0_50, %c0_51] : memref<128x128xf32, #tpu.memory_space<vmem>>, vector<128x128xf32>
    %cst_52 = arith.constant dense<0.000000e+00> : vector<8x128xf32>
    %45 = tpu.matmul %41, %44, %cst_52 {dimension_numbers = #tpu.dot_dimension_numbers<[1], [0], [0], [1], [0, 0, 1, 1], [], []>} : vector<8x128xf32>, vector<128x128xf32>, vector<8x128xf32> -> vector<8x128xf32>
    %46 = arith.addf %43, %45 : vector<8x128xf32>
    %c56 = arith.constant 56 : index
    %c0_53 = arith.constant 0 : index
    %47 = vector.load %arg12[%c56, %c0_53] : memref<96x128xf32, #tpu.memory_space<vmem>>, vector<8x128xf32>
    tpu.vector_store %arg12[%c56, %c0_53], %46 {strides = array<i32>} : memref<96x128xf32, #tpu.memory_space<vmem>>, vector<8x128xf32>,
    %c56_54 = arith.constant 56 : index
    %c128_55 = arith.constant 128 : index
    %48 = vector.load %arg11[%c56_54, %c128_55] : memref<96x256xf32, #tpu.memory_space<vmem>>, vector<8x128xf32>
    %c0_56 = arith.constant 0 : index
    %c0_57 = arith.constant 0 : index
    %49 = vector.load %arg4[%c0_56, %c0_57] : memref<128x128xf32, #tpu.memory_space<vmem>>, vector<128x128xf32>
    %cst_58 = arith.constant dense<0.000000e+00> : vector<8x128xf32>
    %50 = tpu.matmul %46, %49, %cst_58 {dimension_numbers = #tpu.dot_dimension_numbers<[1], [0], [0], [1], [0, 0, 1, 1], [], []>} : vector<8x128xf32>, vector<128x128xf32>, vector<8x128xf32> -> vector<8x128xf32>
    %51 = arith.addf %48, %50 : vector<8x128xf32>
    %c64 = arith.constant 64 : index
    %c0_59 = arith.constant 0 : index
    %52 = vector.load %arg12[%c64, %c0_59] : memref<96x128xf32, #tpu.memory_space<vmem>>, vector<8x128xf32>
    tpu.vector_store %arg12[%c64, %c0_59], %51 {strides = array<i32>} : memref<96x128xf32, #tpu.memory_space<vmem>>, vector<8x128xf32>,
    %c64_60 = arith.constant 64 : index
    %c128_61 = arith.constant 128 : index
    %53 = vector.load %arg11[%c64_60, %c128_61] : memref<96x256xf32, #tpu.memory_space<vmem>>, vector<8x128xf32>
    %c0_62 = arith.constant 0 : index
    %c0_63 = arith.constant 0 : index
    %54 = vector.load %arg4[%c0_62, %c0_63] : memref<128x128xf32, #tpu.memory_space<vmem>>, vector<128x128xf32>
    %cst_64 = arith.constant dense<0.000000e+00> : vector<8x128xf32>
    %55 = tpu.matmul %51, %54, %cst_64 {dimension_numbers = #tpu.dot_dimension_numbers<[1], [0], [0], [1], [0, 0, 1, 1], [], []>} : vector<8x128xf32>, vector<128x128xf32>, vector<8x128xf32> -> vector<8x128xf32>
    %56 = arith.addf %53, %55 : vector<8x128xf32>
    %c72 = arith.constant 72 : index
    %c0_65 = arith.constant 0 : index
    %57 = vector.load %arg12[%c72, %c0_65] : memref<96x128xf32, #tpu.memory_space<vmem>>, vector<8x128xf32>
    tpu.vector_store %arg12[%c72, %c0_65], %56 {strides = array<i32>} : memref<96x128xf32, #tpu.memory_space<vmem>>, vector<8x128xf32>,
    %c72_66 = arith.constant 72 : index
    %c128_67 = arith.constant 128 : index
    %58 = vector.load %arg11[%c72_66, %c128_67] : memref<96x256xf32, #tpu.memory_space<vmem>>, vector<8x128xf32>
    %c0_68 = arith.constant 0 : index
    %c0_69 = arith.constant 0 : index
    %59 = vector.load %arg4[%c0_68, %c0_69] : memref<128x128xf32, #tpu.memory_space<vmem>>, vector<128x128xf32>
    %cst_70 = arith.constant dense<0.000000e+00> : vector<8x128xf32>
    %60 = tpu.matmul %56, %59, %cst_70 {dimension_numbers = #tpu.dot_dimension_numbers<[1], [0], [0], [1], [0, 0, 1, 1], [], []>} : vector<8x128xf32>, vector<128x128xf32>, vector<8x128xf32> -> vector<8x128xf32>
    %61 = arith.addf %58, %60 : vector<8x128xf32>
    %c80 = arith.constant 80 : index
    %c0_71 = arith.constant 0 : index
    %62 = vector.load %arg12[%c80, %c0_71] : memref<96x128xf32, #tpu.memory_space<vmem>>, vector<8x128xf32>
    tpu.vector_store %arg12[%c80, %c0_71], %61 {strides = array<i32>} : memref<96x128xf32, #tpu.memory_space<vmem>>, vector<8x128xf32>,
    %c80_72 = arith.constant 80 : index
    %c128_73 = arith.constant 128 : index
    %63 = vector.load %arg11[%c80_72, %c128_73] : memref<96x256xf32, #tpu.memory_space<vmem>>, vector<8x128xf32>
    %c0_74 = arith.constant 0 : index
    %c0_75 = arith.constant 0 : index
    %64 = vector.load %arg4[%c0_74, %c0_75] : memref<128x128xf32, #tpu.memory_space<vmem>>, vector<128x128xf32>
    %cst_76 = arith.constant dense<0.000000e+00> : vector<8x128xf32>
    %65 = tpu.matmul %61, %64, %cst_76 {dimension_numbers = #tpu.dot_dimension_numbers<[1], [0], [0], [1], [0, 0, 1, 1], [], []>} : vector<8x128xf32>, vector<128x128xf32>, vector<8x128xf32> -> vector<8x128xf32>
    %66 = arith.addf %63, %65 : vector<8x128xf32>
    %c88 = arith.constant 88 : index
    %c0_77 = arith.constant 0 : index
    %67 = vector.load %arg12[%c88, %c0_77] : memref<96x128xf32, #tpu.memory_space<vmem>>, vector<8x128xf32>
    tpu.vector_store %arg12[%c88, %c0_77], %66 {strides = array<i32>} : memref<96x128xf32, #tpu.memory_space<vmem>>, vector<8x128xf32>,
    %c88_78 = arith.constant 88 : index
    %c128_79 = arith.constant 128 : index
    %68 = vector.load %arg11[%c88_78, %c128_79] : memref<96x256xf32, #tpu.memory_space<vmem>>, vector<8x128xf32>
    %c0_80 = arith.constant 0 : index
    %c0_81 = arith.constant 0 : index
    %69 = vector.load %arg4[%c0_80, %c0_81] : memref<128x128xf32, #tpu.memory_space<vmem>>, vector<128x128xf32>
    %cst_82 = arith.constant dense<0.000000e+00> : vector<8x128xf32>
    %70 = tpu.matmul %66, %69, %cst_82 {dimension_numbers = #tpu.dot_dimension_numbers<[1], [0], [0], [1], [0, 0, 1, 1], [], []>} : vector<8x128xf32>, vector<128x128xf32>, vector<8x128xf32> -> vector<8x128xf32>
    %71 = arith.addf %68, %70 : vector<8x128xf32>
    %c0_83 = arith.constant 0 : index
    %c0_84 = arith.constant 0 : index
    %72 = vector.load %arg10[%c0_83, %c0_84] : memref<8x128xf32, #tpu.memory_space<vmem>>, vector<8x128xf32>
    tpu.vector_store %arg10[%c0_83, %c0_84], %71 {strides = array<i32>} : memref<8x128xf32, #tpu.memory_space<vmem>>, vector<8x128xf32>,
    %c0_85 = arith.constant 0 : index
    %c0_86 = arith.constant 0 : index
    %73 = vector.load %arg11[%c0_85, %c0_86] : memref<96x256xf32, #tpu.memory_space<vmem>>, vector<96x128xf32>
    %c0_87 = arith.constant 0 : index
    %c0_88 = arith.constant 0 : index
    %74 = vector.load %arg12[%c0_87, %c0_88] : memref<96x128xf32, #tpu.memory_space<vmem>>, vector<96x128xf32>
    %c0_89 = arith.constant 0 : index
    %c0_90 = arith.constant 0 : index
    %75 = vector.load %arg5[%c0_89, %c0_90] : memref<128x128xf32, #tpu.memory_space<vmem>>, vector<128x128xf32>
    %cst_91 = arith.constant dense<0.000000e+00> : vector<96x128xf32>
    %76 = tpu.matmul %74, %75, %cst_91 {dimension_numbers = #tpu.dot_dimension_numbers<[1], [0], [0], [1], [0, 0, 1, 1], [], []>} : vector<96x128xf32>, vector<128x128xf32>, vector<96x128xf32> -> vector<96x128xf32>
    %77 = arith.addf %73, %76 : vector<96x128xf32>
    %cst_92 = arith.constant dense<0xFF800000> : vector<96xf32>
    %78 = vector.multi_reduction <maximumf>, %77, %cst_92 [1] : vector<96x128xf32> to vector<96xf32>
    %79 = vector.shape_cast %78 : vector<96xf32> to vector<96x1xf32>
    %80 = vector.broadcast %79 : vector<96x1xf32> to vector<96x128xf32>
    %81 = arith.subf %77, %80 : vector<96x128xf32>
    %82 = math.exp %81 : vector<96x128xf32>
    %cst_93 = arith.constant dense<0.000000e+00> : vector<96xf32>
    %83 = vector.multi_reduction <add>, %82, %cst_93 [1] : vector<96x128xf32> to vector<96xf32>
    %84 = vector.shape_cast %83 : vector<96xf32> to vector<96x1xf32>
    %85 = math.log %84 : vector<96x1xf32>
    %86 = vector.broadcast %85 : vector<96x1xf32> to vector<96x128xf32>
    %87 = arith.subf %81, %86 : vector<96x128xf32>
    %88 = vector.shape_cast %87 : vector<96x128xf32> to vector<12x8x128xf32>
    %c0_94 = arith.constant 0 : index
    %c0_95 = arith.constant 0 : index
    %c0_96 = arith.constant 0 : index
    %89 = vector.load %arg8[%c0_94, %c0_95, %c0_96] : memref<12x8x128xf32, #tpu.memory_space<vmem>>, vector<12x8x128xf32>
    tpu.vector_store %arg8[%c0_94, %c0_95, %c0_96], %88 {strides = array<i32>} : memref<12x8x128xf32, #tpu.memory_space<vmem>>, vector<12x8x128xf32>,
    %c0_i32_97 = arith.constant 0 : i32
    %90 = arith.cmpi eq, %arg1, %c0_i32_97 : i32
    %91 = arith.extui %90 : i1 to i32
    %c0_i32_98 = arith.constant 0 : i32
    %92 = arith.cmpi ne, %91, %c0_i32_98 : i32
    scf.if %92 {
      %c0_99 = arith.constant 0 : index
      %c0_100 = arith.constant 0 : index
      %93 = vector.load %arg9[%c0_99, %c0_100] : memref<8x128xf32, #tpu.memory_space<vmem>>, vector<8x128xf32>
      tpu.vector_store %arg9[%c0_99, %c0_100], %71 {strides = array<i32>} : memref<8x128xf32, #tpu.memory_space<vmem>>, vector<8x128xf32>,
    } else {
    }
    return
  }
  func.func @transform_0(%arg0: i32, %arg1: i32) -> (i32, i32, i32) {
    %c0_i32 = arith.constant 0 : i32
    %c0_i32_0 = arith.constant 0 : i32
    return %arg1, %arg0, %c0_i32 : i32, i32, i32
  }
  func.func @transform_1(%arg0: i32, %arg1: i32) -> (i32, i32) {
    %c0_i32 = arith.constant 0 : i32
    %c0_i32_0 = arith.constant 0 : i32
    %c0_i32_1 = arith.constant 0 : i32
    return %c0_i32, %c0_i32_0 : i32, i32
  }
  func.func @transform_2(%arg0: i32, %arg1: i32) -> (i32, i32) {
    %c0_i32 = arith.constant 0 : i32
    %c0_i32_0 = arith.constant 0 : i32
    %c0_i32_1 = arith.constant 0 : i32
    return %c0_i32, %c0_i32_0 : i32, i32
  }
  func.func @transform_3(%arg0: i32, %arg1: i32) -> (i32, i32) {
    %c0_i32 = arith.constant 0 : i32
    %c0_i32_0 = arith.constant 0 : i32
    %c0_i32_1 = arith.constant 0 : i32
    return %c0_i32, %c0_i32_0 : i32, i32
  }
  func.func @transform_4(%arg0: i32, %arg1: i32) -> (i32, i32) {
    %c0_i32 = arith.constant 0 : i32
    %c0_i32_0 = arith.constant 0 : i32
    %c0_i32_1 = arith.constant 0 : i32
    return %c0_i32, %c0_i32_0 : i32, i32
  }
  func.func @transform_5(%arg0: i32, %arg1: i32) -> (i32, i32) {
    %c0_i32 = arith.constant 0 : i32
    %c0_i32_0 = arith.constant 0 : i32
    return %arg0, %c0_i32 : i32, i32
  }
  func.func @transform_6(%arg0: i32, %arg1: i32) -> (i32, i32, i32) {
    %c0_i32 = arith.constant 0 : i32
    %c0_i32_0 = arith.constant 0 : i32
    return %arg1, %arg0, %c0_i32 : i32, i32, i32
  }
  func.func @transform_7(%arg0: i32, %arg1: i32) -> (i32, i32) {
    %c0_i32 = arith.constant 0 : i32
    %c0_i32_0 = arith.constant 0 : i32
    return %arg0, %c0_i32 : i32, i32
  }
}

</mosaic_0001>

<bundles_post_ra>
// kernel: rnn_forward_sequence.1
= control target key start
LH: loop header
LB: loop body
LE: loop exit
PB: predicated region body
PF: predicated region fallthrough
CT: control target
= control target key end

     0   :  { %v2773_v3 = vmov 0.0|0.0   ;;  %v2774_v6 = vmov 0.0   ;;  %vm2775_vm0 = vmmov 0   ;;  %vm60_vm1 = vcmask 130048   ;;  %s3479_s0 = inlined_call_operand.vmem [shape: f32[12,8,16], index: 0, kind: input, shape index: {}]   ;;  %s3480_s1 = inlined_call_operand.vmem [shape: f32[16,256], index: 1, kind: input, shape index: {}]   ;;  %s3481_s2 = inlined_call_operand.vmem [shape: f32[128,128], index: 2, kind: input, shape index: {}]   ;;  %s3482_s3 = inlined_call_operand.vmem [shape: f32[128,128], index: 3, kind: input, shape index: {}]   ;;  %s3483_s4 = inlined_call_operand.vmem [shape: f32[1,256], index: 4, kind: input, shape index: {}]   ;;  %s3484_s5 = inlined_call_operand.vmem [shape: f32[8,128], index: 5, kind: input, shape index: {}]   ;;  %s3485_s6 = inlined_call_operand.vmem [shape: f32[12,8,128], index: 6, kind: output, shape index: {0}]   ;;  %s3486_s7 = inlined_call_operand.hbm [shape: f32[8,128], index: 7, kind: output, shape index: {1}]  }
   0x1   :  { %v261_v0 = vld [vmem:[%s3481_s2] sm:$0xff]  ;;  %v262_v1 = vld [vmem:[%s3481_s2 + $0x8] sm:$0xff]  ;;  %v263_v2 = vld [vmem:[%s3481_s2 + $0x10] sm:$0xff]  ;;  %2377 = vmatprep.subr.bf16.mxu1 %v2773_v3  ;;  %161 = vmatprep.mubr.f32.mxu0 %v2774_v6 }
   0x2   :  { %v2827_v4 = vpack.c.bf16 %v262_v1, %v261_v0  ;;  %v264_v5 = vld [vmem:[%s3481_s2 + $0x18] sm:$0xff]  ;;  %1935 = vmatprep.mubr.msk.f32.mxu1 %vm2775_vm0, %v2774_v6  ;;  %v265_v8 = vld [vmem:[%s3481_s2 + $0x20] sm:$0xff]  ;;  %v266_v9 = vld [vmem:[%s3481_s2 + $0x28] sm:$0xff] }
   0x3   :  { %v2836_v7 = vpack.c.bf16 %v264_v5, %v263_v2  ;;  %v45_v10 = vld [vmem:[%s3480_s1 + $0x8] sm:$0xff]  ;;  %v47_v11 = vld [vmem:[%s3480_s1 + $0x18] sm:$0xff]  ;;  %v44_v12 = vld [vmem:[%s3480_s1] sm:$0xff]  ;;  %v2858_v16 = vpack.c.bf16 %v266_v9, %v265_v8 }
   0x4   :  { %2379 = vmatpush3.bf16.msra.mxu1 %v2827_v4  ;;  %v2373_v13 = vpack.c.bf16 %v47_v11, %v45_v10  ;;  %v46_v14 = vld [vmem:[%s3480_s1 + $0x10] sm:$0xff]  ;;  %v268_v18 = vld [vmem:[%s3481_s2 + $0x38] sm:$0xff]  ;;  %v32_v19 = vld [vmem:[%s3479_s0] sm:$0xff] }
   0x5   :  { %2380 = vmatprep.subr.bf16.mxu1 %v2773_v3  ;;  %v2375_v15 = vpack.c.bf16 %v46_v14, %v44_v12  ;;  %v267_v17 = vld [vmem:[%s3481_s2 + $0x30] sm:$0xff] }
   0x6   :  { %2374 = vmatprep.subr.bf16.mxu0 %v2373_v13  ;;  %v2872_v20 = vpack.c.bf16 %v268_v18, %v267_v17 }
   0x7   :  { %2376 = vmatpush1.bf16.msra.mxu0 %v2375_v15 }
   0x8   :  { %2382 = vmatpush3.bf16.msra.mxu1 %v2836_v7  ;;  %2401 = vmatprep.subr.bf16.mxu0 %v2773_v3 }
   0x9   :  { %2383 = vmatprep.subr.bf16.mxu1 %v2773_v3 }
   0xa   :  { %1659 = vmatmul.mubr.msk.f32.vlgmr.msra.gmra.mrb[0].mxu0 %vm60_vm1, %v32_v19 }
   0xc   :  { %2385 = vmatpush3.bf16.msra.mxu1 %v2858_v16 }
   0xd   :  { %13 = vsyncpa [#allocation6], 0  ;;  %2386 = vmatprep.subr.bf16.mxu1 %v2773_v3  ;;  %v269_v21 = vld [vmem:[%s3481_s2 + $0x40] sm:$0xff]  ;;  %v270_v22 = vld [vmem:[%s3481_s2 + $0x48] sm:$0xff]  ;;  %2403 = vmatpush3.bf16.msra.mxu0 %v2827_v4  ;;  %v50_v47 = vlaneseq }
   0xe   :  { %v33_v23 = vld [vmem:[%s3479_s0 + $0x8] sm:$0xff]  ;;  %167 = vmatprep.mubr.f32.mxu0 %v2774_v6  ;;  %2404 = vmatprep.subr.bf16.mxu0 %v2773_v3  ;;  %v2889_v24 = vpack.c.bf16 %v270_v22, %v269_v21  ;;  %v271_v25 = vld [vmem:[%s3481_s2 + $0x50] sm:$0xff]  ;;  %v272_v26 = vld [vmem:[%s3481_s2 + $0x58] sm:$0xff] }
   0xf   :  { %1660 = vmatmul.mubr.msk.f32.gmra.mrb[2].mxu0 %vm60_vm1, %v33_v23  ;;  %v34_v27 = vld [vmem:[%s3479_s0 + $0x10] sm:$0xff]  ;;  %v2906_v28 = vpack.c.bf16 %v272_v26, %v271_v25  ;;  %v273_v29 = vld [vmem:[%s3481_s2 + $0x60] sm:$0xff]  ;;  %v274_v30 = vld [vmem:[%s3481_s2 + $0x68] sm:$0xff]  ;;  %v3019_v50 = vshrl.u32 %v50_v47, 7 }
  0x10   :  { %2388 = vmatpush3.bf16.msra.mxu1 %v2872_v20  ;;  %173 = vmatprep.mubr.f32.mxu0 %v2774_v6  ;;  %v35_v31 = vld [vmem:[%s3479_s0 + $0x18] sm:$0xff]  ;;  %v2923_v32 = vpack.c.bf16 %v274_v30, %v273_v29  ;;  %v275_v33 = vld [vmem:[%s3481_s2 + $0x70] sm:$0xff]  ;;  %v36_v35 = vld [vmem:[%s3479_s0 + $0x20] sm:$0xff] }
  0x11   :  { %2389 = vmatprep.subr.bf16.mxu1 %v2773_v3  ;;  %2406 = vmatpush3.bf16.msra.mxu0 %v2836_v7  ;;  %v276_v34 = vld [vmem:[%s3481_s2 + $0x78] sm:$0xff]  ;;  %v37_v37 = vld [vmem:[%s3479_s0 + $0x28] sm:$0xff]  ;;  %v2954_v38 = vld [vmem:[%s3484_s5] sm:$0xff]  ;;  %v56_v53 = vsub.s32 1, %v3019_v50 }
  0x12   :  { %2407 = vmatprep.subr.bf16.mxu0 %v2773_v3  ;;  %v2940_v36 = vpack.c.bf16 %v276_v34, %v275_v33  ;;  %v38_v39 = vld [vmem:[%s3479_s0 + $0x30] sm:$0xff]  ;;  %v39_v40 = vld [vmem:[%s3479_s0 + $0x38] sm:$0xff]  ;;  %v40_v41 = vld [vmem:[%s3479_s0 + $0x40] sm:$0xff] }
  0x13   :  { %1661 = vmatmul.mubr.msk.f32.gmra.mrb[4].mxu0 %vm60_vm1, %v34_v27  ;;  %v41_v42 = vld [vmem:[%s3479_s0 + $0x48] sm:$0xff]  ;;  %v42_v43 = vld [vmem:[%s3479_s0 + $0x50] sm:$0xff]  ;;  %v43_v44 = vld [vmem:[%s3479_s0 + $0x58] sm:$0xff] }
  0x14   :  { %2391 = vmatpush3.bf16.msra.mxu1 %v2889_v24  ;;  %179 = vmatprep.mubr.f32.mxu0 %v2774_v6  ;;  %v3031_v55 = vld [vmem:[%s3483_s4] sm:$0x3]  ;;  %s2776_s4 = smov [#allocation5]  }
  0x15   :  { %2392 = vmatprep.subr.bf16.mxu1 %v2773_v3  ;;  %2409 = vmatpush3.bf16.msra.mxu0 %v2858_v16  ;;  %v3036_v57 = vrot.slane %v3031_v55, %v56_v53  ;;  %v1154_v53 = vld [vmem:[%s3481_s2 + $0x18] sm:$0xff]  ;;  %s1649_s19 = sshll.u32 %s2776_s4, 4  ;;  %s1650_s19 = int_to_ptr.vmem [resolvable:$true] %s1649_s19 }
  0x16   :  { %2410 = vmatprep.subr.bf16.mxu0 %v2773_v3  ;;  %s2749_s20 = scalar_lea.vmem %s1650_s19, 128  ;;  %p2754_p1 = scmp.lt.s32.totalorder %s1650_s19, %s1650_s19 }
  0x17   :  { %1662 = vmatmul.mubr.msk.f32.gmra.mrb[6].mxu0 %vm60_vm1, %v35_v31  ;;  %p2750_p0 = scmp.ne.s32.totalorder %s1650_s19, %s2749_s20  ;;  %p2755_p2 = scmp.lt.s32.totalorder %s2749_s20, %s2749_s20 }
  0x18   :  { %2394 = vmatpush3.bf16.msra.mxu1 %v2906_v28  ;;  %185 = vmatprep.mubr.f32.mxu0 %v2774_v6 }
  0x19   :  { %2395 = vmatprep.subr.bf16.mxu1 %v2773_v3  ;;  %2412 = vmatpush3.bf16.msra.mxu0 %v2872_v20  ;;  %p2756_p3 = por %p2755_p2, %p2754_p1 }
  0x1a   :  { %2413 = vmatprep.subr.bf16.mxu0 %v2773_v3 }
  0x1b   :  { %1663 = vmatmul.mubr.msk.f32.gmra.mrb[8].mxu0 %vm60_vm1, %v36_v35  ;;  %p2757_p4 = pnand %p2756_p3, %p2750_p0 }
  0x1c   :  { %2397 = vmatpush3.bf16.msra.mxu1 %v2923_v32  ;;  %191 = vmatprep.mubr.f32.mxu0 %v2774_v6 }
  0x1d   :  { %2398 = vmatprep.subr.bf16.mxu1 %v2773_v3  ;;  %2415 = vmatpush3.bf16.msra.mxu0 %v2889_v24 }
  0x1e   :  { %2416 = vmatprep.subr.bf16.mxu0 %v2773_v3 }
  0x1f   :  { %1664 = vmatmul.mubr.msk.f32.gmra.mrb[10].mxu0 %vm60_vm1, %v37_v37 }
  0x20   :  { %2400 = vmatpush3.bf16.msra.mxu1 %v2940_v36  ;;  %197 = vmatprep.mubr.f32.mxu0 %v2774_v6 }
  0x21   :  { %2425 = vmatprep.subr.bf16.mxu1 %v2773_v3  ;;  %2418 = vmatpush3.bf16.msra.mxu0 %v2906_v28 }
  0x22   :  { %2419 = vmatprep.subr.bf16.mxu0 %v2773_v3 }
  0x23   :  { %1936 = vmatmul.mubr.f32.vlgmr.msra.gmra.mrb[0].mxu1 %v2954_v38  ;;  %1665 = vmatmul.mubr.msk.f32.gmra.mrb[12].mxu0 %vm60_vm1, %v38_v39 }
  0x24   :  { %2427 = vmatpush3.bf16.msra.mxu1 %v2827_v4  ;;  %203 = vmatprep.mubr.f32.mxu0 %v2774_v6 }
  0x25   :  { %2428 = vmatprep.subr.bf16.mxu1 %v2773_v3  ;;  %2421 = vmatpush3.bf16.msra.mxu0 %v2923_v32 }
  0x26   :  { %2005 = vmatprep.mubr.msk.f32.mxu1 %vm2775_vm0, %v2774_v6  ;;  %2422 = vmatprep.subr.bf16.mxu0 %v2773_v3 }
  0x27   :  { %1666 = vmatmul.mubr.msk.f32.gmra.mrb[14].mxu0 %vm60_vm1, %v39_v40 }
  0x28   :  { %2430 = vmatpush3.bf16.msra.mxu1 %v2836_v7  ;;  %209 = vmatprep.mubr.f32.mxu0 %v2774_v6 }
  0x29   :  { %2431 = vmatprep.subr.bf16.mxu1 %v2773_v3  ;;  %2424 = vmatpush3.bf16.msra.mxu0 %v2940_v36 }
  0x2a   :  { %2449 = vmatprep.subr.bf16.mxu0 %v2773_v3 }
  0x2b   :  { %1667 = vmatmul.mubr.msk.f32.gmra.mrb[16].mxu0 %vm60_vm1, %v40_v41 }
  0x2c   :  { %2433 = vmatpush3.bf16.msra.mxu1 %v2858_v16  ;;  %215 = vmatprep.mubr.f32.mxu0 %v2774_v6 }
  0x2d   :  { %2434 = vmatprep.subr.bf16.mxu1 %v2773_v3 }
  0x2f   :  { %1668 = vmatmul.mubr.msk.f32.gmra.mrb[18].mxu0 %vm60_vm1, %v41_v42 }
  0x30   :  { %2436 = vmatpush3.bf16.msra.mxu1 %v2872_v20  ;;  %221 = vmatprep.mubr.f32.mxu0 %v2774_v6 }
  0x31   :  { %2437 = vmatprep.subr.bf16.mxu1 %v2773_v3 }
  0x33   :  { %1669 = vmatmul.mubr.msk.f32.gmra.mrb[20].mxu0 %vm60_vm1, %v42_v43 }
  0x34   :  { %2439 = vmatpush3.bf16.msra.mxu1 %v2889_v24  ;;  %227 = vmatprep.mubr.f32.mxu0 %v2774_v6 }
  0x35   :  { %2440 = vmatprep.subr.bf16.mxu1 %v2773_v3 }
  0x37   :  { %1670 = vmatmul.mubr.msk.f32.gmra.mrb[22].mxu0 %vm60_vm1, %v43_v44 }
  0x38   :  { %2442 = vmatpush3.bf16.msra.mxu1 %v2906_v28  ;;  %1970 = vmatprep.mubr.msk.f32.mxu0 %vm2775_vm0, %v2774_v6 }
  0x39   :  { %2443 = vmatprep.subr.bf16.mxu1 %v2773_v3 }
  0x3c   :  { %2445 = vmatpush3.bf16.msra.mxu1 %v2923_v32 }
  0x3d   :  { %2446 = vmatprep.subr.bf16.mxu1 %v2773_v3 }
  0x40   :  { %2448 = vmatpush3.bf16.msra.mxu1 %v2940_v36 }
  0x41   :  { %2473 = vmatprep.subr.bf16.mxu1 %v2773_v3 }
  0xdd   :  { %v3015_v45 = vpop.f32.mrb[0].mxu0 }
  0xde   :  { %v165_v46 = vpop.f32.mrb[1].mxu0 }
  0xdf   :  { %v166_v60 = vadd.f32 %v165_v46, %v3036_v57 }
  0xe2   :  { %v3017_v48 = vpop.f32.mrb[2].mxu0 }
  0xe3   :  { %v171_v49 = vpop.f32.mrb[3].mxu0 }
  0xe4   :  { %v172_v19 = vadd.f32 %v171_v49, %v3036_v57 }
  0xe6   :  { %v3021_v51 = vpop.f32.mrb[4].mxu0 }
  0xe7   :  { %v3023_v52 = vpop.f32.mrb[5].mxu0 }
  0xe8   :  { %v178_v25 = vadd.f32 %v3023_v52, %v3036_v57 }
  0xea   :  { %v3026_v54 = vpop.f32.mrb[6].mxu0 }
  0xeb   :  { %v3033_v56 = vpop.f32.mrb[7].mxu0 }
  0xec   :  { %v184_v30 = vadd.f32 %v3033_v56, %v3036_v57 }
  0xee   :  { %v3038_v58 = vpop.f32.mrb[8].mxu0 }
  0xef   :  { %v3040_v59 = vpop.f32.mrb[9].mxu0 }
  0xf0   :  { %v190_v35 = vadd.f32 %v3040_v59, %v3036_v57  ;;  %v1155_v59 = vld [vmem:[%s3481_s2 + $0x20] sm:$0xff] }
  0xf2   :  { %v3043_v61 = vpop.f32.mrb[10].mxu0 }
  0xf3   :  { %v3045_v62 = vpop.f32.mrb[11].mxu0 }
  0xf4   :  { %v196_v41 = vadd.f32 %v3045_v62, %v3036_v57 }
  0xf6   :  { %v343_v63 = vpop.f32.mrb[0].mxu1  ;;  %v3049_v2 = vpop.f32.mrb[12].mxu0 }
  0xf7   :  { %v3047_v0 = vadd.f32 %v343_v63, %v166_v60  ;;  %v1937_v1 = vpop.f32.mrb[1].mxu1  ;;  %v3051_v5 = vpop.f32.mrb[13].mxu0  ;;  %v1156_v60 = vld [vmem:[%s3481_s2 + $0x28] sm:$0xff]  ;;  %v1157_v63 = vld [vmem:[%s3481_s2 + $0x30] sm:$0xff] }
  0xf8   :  { %v202_v46 = vadd.f32 %v3051_v5, %v3036_v57  ;;  %v2624_v62 = vpack.c.bf16 %v1156_v60, %v1155_v59  ;;  %v1158_v1 = vld [vmem:[%s3481_s2 + $0x38] sm:$0xff]  ;;  %v1360_v59 = vld [vmem:[%s3482_s3 + $0x40] sm:$0xff] }
  0xf9   :  { %1971 = vmatmul.mubr.f32.vlgmr.msra.gmra.mrb[24].mxu0 %v3047_v0  ;;  %v2627_v5 = vpack.c.bf16 %v1158_v1, %v1157_v63  ;;  %v1363_v63 = vld [vmem:[%s3482_s3 + $0x58] sm:$0xff] }
  0xfa   :  { %2451 = vmatpush3.bf16.msra.mxu0 %v2827_v4  ;;  %2040 = vmatprep.mubr.msk.f32.mxu0 %vm2775_vm0, %v2774_v6  ;;  %v3057_v8 = vpop.f32.mrb[14].mxu0 }
  0xfb   :  { %2452 = vmatprep.subr.bf16.mxu0 %v2773_v3  ;;  %v3060_v9 = vpop.f32.mrb[15].mxu0 }
  0xfe   :  { %2454 = vmatpush3.bf16.msra.mxu0 %v2836_v7  ;;  %v3063_v10 = vpop.f32.mrb[16].mxu0 }
  0xff   :  { %2455 = vmatprep.subr.bf16.mxu0 %v2773_v3  ;;  %v3066_v11 = vpop.f32.mrb[17].mxu0 }
 0x102   :  { %2457 = vmatpush3.bf16.msra.mxu0 %v2858_v16  ;;  %v3069_v12 = vpop.f32.mrb[18].mxu0 }
 0x103   :  { %2458 = vmatprep.subr.bf16.mxu0 %v2773_v3  ;;  %v3072_v13 = vpop.f32.mrb[19].mxu0 }
 0x106   :  { %2460 = vmatpush3.bf16.msra.mxu0 %v2872_v20  ;;  %v3075_v14 = vpop.f32.mrb[20].mxu0 }
 0x107   :  { %2461 = vmatprep.subr.bf16.mxu0 %v2773_v3  ;;  %v3078_v15 = vpop.f32.mrb[21].mxu0 }
 0x10a   :  { %2463 = vmatpush3.bf16.msra.mxu0 %v2889_v24  ;;  %v3088_v17 = vpop.f32.mrb[22].mxu0 }
 0x10b   :  { %2464 = vmatprep.subr.bf16.mxu0 %v2773_v3  ;;  %v3090_v18 = vpop.f32.mrb[23].mxu0 }
 0x10e   :  { %2466 = vmatpush3.bf16.msra.mxu0 %v2906_v28 }
 0x10f   :  { %2467 = vmatprep.subr.bf16.mxu0 %v2773_v3 }
 0x112   :  { %2469 = vmatpush3.bf16.msra.mxu0 %v2923_v32 }
 0x113   :  { %2470 = vmatprep.subr.bf16.mxu0 %v2773_v3 }
 0x116   :  { %2472 = vmatpush3.bf16.msra.mxu0 %v2940_v36 }
 0x117   :  { %2497 = vmatprep.subr.bf16.mxu0 %v2773_v3 }
 0x1cc   :  { %v432_v21 = vpop.f32.mrb[24].mxu0 }
 0x1cd   :  { %v3093_v22 = vadd.f32 %v432_v21, %v172_v19  ;;  %v1972_v23 = vpop.f32.mrb[25].mxu0  ;;  %v1160_v19 = vld [vmem:[%s3481_s2 + $0x48] sm:$0xff] }
 0x1ce   :  { %v1161_v23 = vld [vmem:[%s3481_s2 + $0x50] sm:$0xff] }
 0x1cf   :  { %2006 = vmatmul.mubr.f32.vlgmr.msra.gmra.mrb[2].mxu1 %v3093_v22 }
 0x1d0   :  { %2475 = vmatpush3.bf16.msra.mxu1 %v2827_v4  ;;  %2075 = vmatprep.mubr.msk.f32.mxu1 %vm2775_vm0, %v2774_v6 }
 0x1d1   :  { %2476 = vmatprep.subr.bf16.mxu1 %v2773_v3 }
 0x1d4   :  { %2478 = vmatpush3.bf16.msra.mxu1 %v2836_v7 }
 0x1d5   :  { %2479 = vmatprep.subr.bf16.mxu1 %v2773_v3 }
 0x1d8   :  { %2481 = vmatpush3.bf16.msra.mxu1 %v2858_v16 }
 0x1d9   :  { %2482 = vmatprep.subr.bf16.mxu1 %v2773_v3 }
 0x1dc   :  { %2484 = vmatpush3.bf16.msra.mxu1 %v2872_v20 }
 0x1dd   :  { %2485 = vmatprep.subr.bf16.mxu1 %v2773_v3 }
 0x1e0   :  { %2487 = vmatpush3.bf16.msra.mxu1 %v2889_v24 }
 0x1e1   :  { %2488 = vmatprep.subr.bf16.mxu1 %v2773_v3 }
 0x1e4   :  { %2490 = vmatpush3.bf16.msra.mxu1 %v2906_v28 }
 0x1e5   :  { %2491 = vmatprep.subr.bf16.mxu1 %v2773_v3 }
 0x1e8   :  { %2493 = vmatpush3.bf16.msra.mxu1 %v2923_v32 }
 0x1e9   :  { %2494 = vmatprep.subr.bf16.mxu1 %v2773_v3 }
 0x1ec   :  { %2496 = vmatpush3.bf16.msra.mxu1 %v2940_v36 }
 0x1ed   :  { %2521 = vmatprep.subr.bf16.mxu1 %v2773_v3 }
 0x2a2   :  { %v521_v26 = vpop.f32.mrb[2].mxu1 }
 0x2a3   :  { %v3116_v27 = vadd.f32 %v521_v26, %v178_v25  ;;  %v2007_v29 = vpop.f32.mrb[3].mxu1  ;;  %v1162_v25 = vld [vmem:[%s3481_s2 + $0x58] sm:$0xff] }
 0x2a4   :  { %v2633_v26 = vpack.c.bf16 %v1162_v25, %v1161_v23  ;;  %v1163_v29 = vld [vmem:[%s3481_s2 + $0x60] sm:$0xff]  ;;  %v1367_v23 = vld [vmem:[%s3482_s3 + $0x78] sm:$0xff] }
 0x2a5   :  { %2041 = vmatmul.mubr.f32.vlgmr.msra.gmra.mrb[26].mxu0 %v3116_v27 }
 0x2a6   :  { %2499 = vmatpush3.bf16.msra.mxu0 %v2827_v4  ;;  %2110 = vmatprep.mubr.msk.f32.mxu0 %vm2775_vm0, %v2774_v6 }
 0x2a7   :  { %2500 = vmatprep.subr.bf16.mxu0 %v2773_v3 }
 0x2aa   :  { %2502 = vmatpush3.bf16.msra.mxu0 %v2836_v7 }
 0x2ab   :  { %2503 = vmatprep.subr.bf16.mxu0 %v2773_v3 }
 0x2ae   :  { %2505 = vmatpush3.bf16.msra.mxu0 %v2858_v16 }
 0x2af   :  { %2506 = vmatprep.subr.bf16.mxu0 %v2773_v3 }
 0x2b2   :  { %2508 = vmatpush3.bf16.msra.mxu0 %v2872_v20 }
 0x2b3   :  { %2509 = vmatprep.subr.bf16.mxu0 %v2773_v3 }
 0x2b6   :  { %2511 = vmatpush3.bf16.msra.mxu0 %v2889_v24 }
 0x2b7   :  { %2512 = vmatprep.subr.bf16.mxu0 %v2773_v3 }
 0x2ba   :  { %2514 = vmatpush3.bf16.msra.mxu0 %v2906_v28 }
 0x2bb   :  { %2515 = vmatprep.subr.bf16.mxu0 %v2773_v3 }
 0x2be   :  { %2517 = vmatpush3.bf16.msra.mxu0 %v2923_v32 }
 0x2bf   :  { %2518 = vmatprep.subr.bf16.mxu0 %v2773_v3 }
 0x2c2   :  { %2520 = vmatpush3.bf16.msra.mxu0 %v2940_v36 }
 0x2c3   :  { %2545 = vmatprep.subr.bf16.mxu0 %v2773_v3 }
 0x378   :  { %v610_v31 = vpop.f32.mrb[26].mxu0 }
 0x379   :  { %v3139_v33 = vadd.f32 %v610_v31, %v184_v30  ;;  %v2042_v34 = vpop.f32.mrb[27].mxu0  ;;  %v1164_v30 = vld [vmem:[%s3481_s2 + $0x68] sm:$0xff] }
 0x37a   :  { %v2636_v31 = vpack.c.bf16 %v1164_v30, %v1163_v29  ;;  %v1165_v34 = vld [vmem:[%s3481_s2 + $0x70] sm:$0xff] }
 0x37b   :  { %2076 = vmatmul.mubr.f32.vlgmr.msra.gmra.mrb[4].mxu1 %v3139_v33 }
 0x37c   :  { %2523 = vmatpush3.bf16.msra.mxu1 %v2827_v4  ;;  %2145 = vmatprep.mubr.msk.f32.mxu1 %vm2775_vm0, %v2774_v6 }
 0x37d   :  { %2524 = vmatprep.subr.bf16.mxu1 %v2773_v3 }
 0x380   :  { %2526 = vmatpush3.bf16.msra.mxu1 %v2836_v7 }
 0x381   :  { %2527 = vmatprep.subr.bf16.mxu1 %v2773_v3 }
 0x384   :  { %2529 = vmatpush3.bf16.msra.mxu1 %v2858_v16 }
 0x385   :  { %2530 = vmatprep.subr.bf16.mxu1 %v2773_v3 }
 0x388   :  { %2532 = vmatpush3.bf16.msra.mxu1 %v2872_v20 }
 0x389   :  { %2533 = vmatprep.subr.bf16.mxu1 %v2773_v3 }
 0x38c   :  { %2535 = vmatpush3.bf16.msra.mxu1 %v2889_v24 }
 0x38d   :  { %2536 = vmatprep.subr.bf16.mxu1 %v2773_v3 }
 0x390   :  { %2538 = vmatpush3.bf16.msra.mxu1 %v2906_v28 }
 0x391   :  { %2539 = vmatprep.subr.bf16.mxu1 %v2773_v3 }
 0x394   :  { %2541 = vmatpush3.bf16.msra.mxu1 %v2923_v32 }
 0x395   :  { %2542 = vmatprep.subr.bf16.mxu1 %v2773_v3 }
 0x398   :  { %2544 = vmatpush3.bf16.msra.mxu1 %v2940_v36 }
 0x399   :  { %2569 = vmatprep.subr.bf16.mxu1 %v2773_v3 }
 0x44e   :  { %v699_v37 = vpop.f32.mrb[4].mxu1 }
 0x44f   :  { %v3162_v39 = vadd.f32 %v699_v37, %v190_v35  ;;  %v2077_v40 = vpop.f32.mrb[5].mxu1  ;;  %v1166_v35 = vld [vmem:[%s3481_s2 + $0x78] sm:$0xff] }
 0x450   :  { %v2639_v37 = vpack.c.bf16 %v1166_v35, %v1165_v34  ;;  %v214_v40 = vadd.f32 %v3066_v11, %v3036_v57  ;;  %v1353_v11 = vld [vmem:[%s3482_s3 + $0x8] sm:$0xff] }
 0x451   :  { %2111 = vmatmul.mubr.f32.vlgmr.msra.gmra.mrb[28].mxu0 %v3162_v39 }
 0x452   :  { %2547 = vmatpush3.bf16.msra.mxu0 %v2827_v4  ;;  %2180 = vmatprep.mubr.msk.f32.mxu0 %vm2775_vm0, %v2774_v6 }
 0x453   :  { %2548 = vmatprep.subr.bf16.mxu0 %v2773_v3 }
 0x456   :  { %2550 = vmatpush3.bf16.msra.mxu0 %v2836_v7 }
 0x457   :  { %2551 = vmatprep.subr.bf16.mxu0 %v2773_v3 }
 0x45a   :  { %2553 = vmatpush3.bf16.msra.mxu0 %v2858_v16 }
 0x45b   :  { %2554 = vmatprep.subr.bf16.mxu0 %v2773_v3 }
 0x45e   :  { %2556 = vmatpush3.bf16.msra.mxu0 %v2872_v20 }
 0x45f   :  { %2557 = vmatprep.subr.bf16.mxu0 %v2773_v3 }
 0x462   :  { %2559 = vmatpush3.bf16.msra.mxu0 %v2889_v24 }
 0x463   :  { %2560 = vmatprep.subr.bf16.mxu0 %v2773_v3 }
 0x466   :  { %2562 = vmatpush3.bf16.msra.mxu0 %v2906_v28 }
 0x467   :  { %2563 = vmatprep.subr.bf16.mxu0 %v2773_v3 }
 0x46a   :  { %2565 = vmatpush3.bf16.msra.mxu0 %v2923_v32 }
 0x46b   :  { %2566 = vmatprep.subr.bf16.mxu0 %v2773_v3 }
 0x46e   :  { %2568 = vmatpush3.bf16.msra.mxu0 %v2940_v36 }
 0x46f   :  { %2593 = vmatprep.subr.bf16.mxu0 %v2773_v3 }
 0x524   :  { %v788_v42 = vpop.f32.mrb[28].mxu0 }
 0x525   :  { %v3185_v43 = vadd.f32 %v788_v42, %v196_v41  ;;  %v2112_v44 = vpop.f32.mrb[29].mxu0 }
 0x527   :  { %2146 = vmatmul.mubr.f32.vlgmr.msra.gmra.mrb[6].mxu1 %v3185_v43 }
 0x528   :  { %2571 = vmatpush3.bf16.msra.mxu1 %v2827_v4  ;;  %2215 = vmatprep.mubr.msk.f32.mxu1 %vm2775_vm0, %v2774_v6 }
 0x529   :  { %2572 = vmatprep.subr.bf16.mxu1 %v2773_v3 }
 0x52c   :  { %2574 = vmatpush3.bf16.msra.mxu1 %v2836_v7 }
 0x52d   :  { %2575 = vmatprep.subr.bf16.mxu1 %v2773_v3 }
 0x530   :  { %2577 = vmatpush3.bf16.msra.mxu1 %v2858_v16 }
 0x531   :  { %2578 = vmatprep.subr.bf16.mxu1 %v2773_v3 }
 0x534   :  { %2580 = vmatpush3.bf16.msra.mxu1 %v2872_v20 }
 0x535   :  { %2581 = vmatprep.subr.bf16.mxu1 %v2773_v3 }
 0x538   :  { %2583 = vmatpush3.bf16.msra.mxu1 %v2889_v24 }
 0x539   :  { %2584 = vmatprep.subr.bf16.mxu1 %v2773_v3 }
 0x53c   :  { %2586 = vmatpush3.bf16.msra.mxu1 %v2906_v28 }
 0x53d   :  { %2587 = vmatprep.subr.bf16.mxu1 %v2773_v3 }
 0x540   :  { %2589 = vmatpush3.bf16.msra.mxu1 %v2923_v32 }
 0x541   :  { %2590 = vmatprep.subr.bf16.mxu1 %v2773_v3 }
 0x544   :  { %2592 = vmatpush3.bf16.msra.mxu1 %v2940_v36 }
 0x545   :  { %2617 = vmatprep.subr.bf16.mxu1 %v2773_v3 }
 0x5fa   :  { %v877_v47 = vpop.f32.mrb[6].mxu1 }
 0x5fb   :  { %v3208_v49 = vadd.f32 %v877_v47, %v202_v46  ;;  %v2147_v52 = vpop.f32.mrb[7].mxu1  ;;  %v1354_v47 = vld [vmem:[%s3482_s3 + $0x10] sm:$0xff] }
 0x5fc   :  { %v1355_v52 = vld [vmem:[%s3482_s3 + $0x18] sm:$0xff] }
 0x5fd   :  { %2181 = vmatmul.mubr.f32.vlgmr.msra.gmra.mrb[30].mxu0 %v3208_v49 }
 0x5fe   :  { %2595 = vmatpush3.bf16.msra.mxu0 %v2827_v4  ;;  %2250 = vmatprep.mubr.msk.f32.mxu0 %vm2775_vm0, %v2774_v6  ;;  %v208_v4 = vadd.f32 %v3060_v9, %v3036_v57  ;;  %v1159_v9 = vld [vmem:[%s3481_s2 + $0x40] sm:$0xff] }
 0x5ff   :  { %2596 = vmatprep.subr.bf16.mxu0 %v2773_v3  ;;  %v2630_v21 = vpack.c.bf16 %v1160_v19, %v1159_v9  ;;  %v1365_v9 = vld [vmem:[%s3482_s3 + $0x68] sm:$0xff] }
 0x602   :  { %2598 = vmatpush3.bf16.msra.mxu0 %v2836_v7 }
 0x603   :  { %2599 = vmatprep.subr.bf16.mxu0 %v2773_v3 }
 0x606   :  { %2601 = vmatpush3.bf16.msra.mxu0 %v2858_v16 }
 0x607   :  { %2602 = vmatprep.subr.bf16.mxu0 %v2773_v3 }
 0x60a   :  { %2604 = vmatpush3.bf16.msra.mxu0 %v2872_v20 }
 0x60b   :  { %2605 = vmatprep.subr.bf16.mxu0 %v2773_v3 }
 0x60e   :  { %2607 = vmatpush3.bf16.msra.mxu0 %v2889_v24  ;;  %v1151_v24 = vld [vmem:[%s3481_s2] sm:$0xff] }
 0x60f   :  { %2608 = vmatprep.subr.bf16.mxu0 %v2773_v3 }
 0x612   :  { %2610 = vmatpush3.bf16.msra.mxu0 %v2906_v28  ;;  %v1152_v28 = vld [vmem:[%s3481_s2 + $0x8] sm:$0xff] }
 0x613   :  { %2611 = vmatprep.subr.bf16.mxu0 %v2773_v3 }
 0x616   :  { %2613 = vmatpush3.bf16.msra.mxu0 %v2923_v32  ;;  %v1153_v32 = vld [vmem:[%s3481_s2 + $0x10] sm:$0xff] }
 0x617   :  { %2614 = vmatprep.subr.bf16.mxu0 %v2773_v3  ;;  %v2621_v56 = vpack.c.bf16 %v1154_v53, %v1153_v32  ;;  %v1357_v32 = vld [vmem:[%s3482_s3 + $0x28] sm:$0xff]  ;;  %v1359_v53 = vld [vmem:[%s3482_s3 + $0x38] sm:$0xff] }
 0x61a   :  { %2616 = vmatpush3.bf16.msra.mxu0 %v2940_v36  ;;  %v2618_v36 = vpack.c.bf16 %v1152_v28, %v1151_v24  ;;  %v2669_v24 = vpack.c.bf16 %v1355_v52, %v1354_v47  ;;  %v1356_v28 = vld [vmem:[%s3482_s3 + $0x20] sm:$0xff] }
 0x61b   :  { %2641 = vmatprep.subr.bf16.mxu0 %v2773_v3 }
 0x6d0   :  { %v966_v7 = vpop.f32.mrb[30].mxu0 }
 0x6d1   :  { %v3231_v16 = vadd.f32 %v966_v7, %v208_v4  ;;  %v2182_v20 = vpop.f32.mrb[31].mxu0 }
 0x6d3   :  { %2216 = vmatmul.mubr.f32.vlgmr.msra.gmra.mrb[8].mxu1 %v3231_v16 }
 0x6d4   :  { %2285 = vmatprep.mubr.msk.f32.mxu1 %vm2775_vm0, %v2774_v6  ;;  %2619 = vmatpush3.bf16.msra.mxu1 %v2618_v36 }
 0x6d5   :  { %2620 = vmatprep.subr.bf16.mxu1 %v2773_v3 }
 0x6d8   :  { %2622 = vmatpush3.bf16.msra.mxu1 %v2621_v56 }
 0x6d9   :  { %2623 = vmatprep.subr.bf16.mxu1 %v2773_v3 }
 0x6dc   :  { %2625 = vmatpush3.bf16.msra.mxu1 %v2624_v62 }
 0x6dd   :  { %2626 = vmatprep.subr.bf16.mxu1 %v2773_v3 }
 0x6e0   :  { %2628 = vmatpush3.bf16.msra.mxu1 %v2627_v5 }
 0x6e1   :  { %2629 = vmatprep.subr.bf16.mxu1 %v2773_v3 }
 0x6e4   :  { %2631 = vmatpush3.bf16.msra.mxu1 %v2630_v21 }
 0x6e5   :  { %2632 = vmatprep.subr.bf16.mxu1 %v2773_v3 }
 0x6e8   :  { %2634 = vmatpush3.bf16.msra.mxu1 %v2633_v26 }
 0x6e9   :  { %2635 = vmatprep.subr.bf16.mxu1 %v2773_v3 }
 0x6ec   :  { %2637 = vmatpush3.bf16.msra.mxu1 %v2636_v31 }
 0x6ed   :  { %2638 = vmatprep.subr.bf16.mxu1 %v2773_v3 }
 0x6f0   :  { %2640 = vmatpush3.bf16.msra.mxu1 %v2639_v37 }
 0x7a6   :  { %v1055_v41 = vpop.f32.mrb[8].mxu1 }
 0x7a7   :  { %v3293_v42 = vadd.f32 %v1055_v41, %v214_v40  ;;  %v2217_v44 = vpop.f32.mrb[9].mxu1 }
 0x7a9   :  { %2251 = vmatmul.mubr.f32.vlgmr.msra.gmra.mrb[32].mxu0 %v3293_v42 }
 0x7aa   :  { %2643 = vmatpush3.bf16.msra.mxu0 %v2618_v36  ;;  %2320 = vmatprep.mubr.msk.f32.mxu0 %vm2775_vm0, %v2774_v6  ;;  %v1352_v6 = vld [vmem:[%s3482_s3] sm:$0xff]  ;;  %v2673_v36 = vpack.c.bf16 %v1357_v32, %v1356_v28 }
 0x7ab   :  { %2644 = vmatprep.subr.bf16.mxu0 %v2773_v3  ;;  %v2665_v46 = vpack.c.bf16 %v1353_v11, %v1352_v6 }
 0x7ad   :  { %2666 = vmatprep.subr.bf16.mxu1 %v2665_v46 }
 0x7ae   :  { %2646 = vmatpush3.bf16.msra.mxu0 %v2621_v56 }
 0x7af   :  { %2647 = vmatprep.subr.bf16.mxu0 %v2773_v3 }
 0x7b2   :  { %2649 = vmatpush3.bf16.msra.mxu0 %v2624_v62  ;;  %v1362_v62 = vld [vmem:[%s3482_s3 + $0x50] sm:$0xff] }
 0x7b3   :  { %2650 = vmatprep.subr.bf16.mxu0 %v2773_v3  ;;  %v2685_v1 = vpack.c.bf16 %v1363_v63, %v1362_v62 }
 0x7b6   :  { %2652 = vmatpush3.bf16.msra.mxu0 %v2627_v5  ;;  %v1364_v5 = vld [vmem:[%s3482_s3 + $0x60] sm:$0xff] }
 0x7b7   :  { %2653 = vmatprep.subr.bf16.mxu0 %v2773_v3  ;;  %v2689_v19 = vpack.c.bf16 %v1365_v9, %v1364_v5 }
 0x7ba   :  { %2655 = vmatpush3.bf16.msra.mxu0 %v2630_v21  ;;  %v1366_v21 = vld [vmem:[%s3482_s3 + $0x70] sm:$0xff] }
 0x7bb   :  { %2656 = vmatprep.subr.bf16.mxu0 %v2773_v3  ;;  %v2693_v25 = vpack.c.bf16 %v1367_v23, %v1366_v21 }
 0x7be   :  { %2658 = vmatpush3.bf16.msra.mxu0 %v2633_v26 }
 0x7bf   :  { %2659 = vmatprep.subr.bf16.mxu0 %v2773_v3 }
 0x7c2   :  { %2661 = vmatpush3.bf16.msra.mxu0 %v2636_v31 }
 0x7c3   :  { %2662 = vmatprep.subr.bf16.mxu0 %v2773_v3  ;;  %v220_v3 = vadd.f32 %v3072_v13, %v3036_v57  ;;  %v1358_v13 = vld [vmem:[%s3482_s3 + $0x30] sm:$0xff] }
 0x7c4   :  { %v2677_v56 = vpack.c.bf16 %v1359_v53, %v1358_v13 }
 0x7c6   :  { %2664 = vmatpush3.bf16.msra.mxu0 %v2639_v37 }
 0x87c   :  { %v1144_v4 = vpop.f32.mrb[32].mxu0 }
 0x87d   :  { %v1148_v7 = vadd.f32 %v1144_v4, %v220_v3  ;;  %v2252_v20 = vpop.f32.mrb[33].mxu0 }
 0x87f   :  { %2286 = vmatmul.mubr.f32.vlgmr.msra.gmra.mrb[10].mxu1 %v1148_v7 }
 0x880   :  { %2668 = vmatpush3.bf16.msra.mxu1 %v2665_v46  ;;  %2355 = vmatprep.mubr.f32.mxu1 %v2954_v38  ;;  %v1361_v38 = vld [vmem:[%s3482_s3 + $0x48] sm:$0xff] }
 0x881   :  { %2670 = vmatprep.subr.bf16.mxu1 %v2669_v24  ;;  %v2681_v60 = vpack.c.bf16 %v1361_v38, %v1360_v59 }
 0x884   :  { %2672 = vmatpush3.bf16.msra.mxu1 %v2669_v24 }
 0x885   :  { %2674 = vmatprep.subr.bf16.mxu1 %v2673_v36 }
 0x888   :  { %2676 = vmatpush3.bf16.msra.mxu1 %v2673_v36 }
 0x889   :  { %2678 = vmatprep.subr.bf16.mxu1 %v2677_v56 }
 0x88c   :  { %2680 = vmatpush3.bf16.msra.mxu1 %v2677_v56 }
 0x88d   :  { %2682 = vmatprep.subr.bf16.mxu1 %v2681_v60 }
 0x890   :  { %2684 = vmatpush3.bf16.msra.mxu1 %v2681_v60 }
 0x891   :  { %2686 = vmatprep.subr.bf16.mxu1 %v2685_v1 }
 0x894   :  { %2688 = vmatpush3.bf16.msra.mxu1 %v2685_v1 }
 0x895   :  { %2690 = vmatprep.subr.bf16.mxu1 %v2689_v19 }
 0x898   :  { %2692 = vmatpush3.bf16.msra.mxu1 %v2689_v19  ;;  %v232_v19 = vadd.f32 %v3090_v18, %v3036_v57 }
 0x899   :  { %2694 = vmatprep.subr.bf16.mxu1 %v2693_v25 }
 0x89c   :  { %2696 = vmatpush3.bf16.msra.mxu1 %v2693_v25 }
 0x89f   :  { %2356 = vmatmul.mubr.f32.vlgmr.msra.gmra.mrb[12].mxu1 %v3047_v0  ;;  %v226_v0 = vadd.f32 %v3078_v15, %v3036_v57 }
 0x8a0   :  { %2358 = vmatprep.mubr.f32.mxu1 %v3093_v22 }
 0x8a3   :  { %2359 = vmatmul.mubr.f32.gmra.mrb[14].mxu1 %v3116_v27  ;;  %v52_v27 = vsub.s32 0, %v3019_v50 }
 0x8a4   :  { %2361 = vmatprep.mubr.f32.mxu1 %v3139_v33 }
 0x8a5   :  { %v53_v33 = vrot.slane %v3031_v55, %v52_v27 }
 0x8a7   :  { %2362 = vmatmul.mubr.f32.gmra.mrb[16].mxu1 %v3162_v39  ;;  %v170_v39 = vadd.f32 %v3017_v48, %v53_v33  ;;  %v182_v34 = vadd.f32 %v3026_v54, %v53_v33  ;;  %v176_v15 = vadd.f32 %v3021_v51, %v53_v33  ;;  %v194_v50 = vadd.f32 %v3043_v61, %v53_v33 }
 0x8a8   :  { %2364 = vmatprep.mubr.f32.mxu1 %v3185_v43  ;;  %v164_v43 = vadd.f32 %v3015_v45, %v53_v33  ;;  %v188_v48 = vadd.f32 %v3038_v58, %v53_v33  ;;  %v206_v6 = vadd.f32 %v3057_v8, %v53_v33  ;;  %v200_v54 = vadd.f32 %v3049_v2, %v53_v33 }
 0x8a9   :  { %v218_v61 = vadd.f32 %v3069_v12, %v53_v33  ;;  %v212_v52 = vadd.f32 %v3063_v10, %v53_v33  ;;  %v224_v5 = vadd.f32 %v3075_v14, %v53_v33  ;;  %v230_v9 = vadd.f32 %v3088_v17, %v53_v33 }
 0x8ab   :  { %2365 = vmatmul.mubr.f32.gmra.mrb[18].mxu1 %v3208_v49 }
 0x8ac   :  { %2367 = vmatprep.mubr.f32.mxu1 %v3231_v16 }
 0x8af   :  { %2368 = vmatmul.mubr.f32.gmra.mrb[20].mxu1 %v3293_v42 }
 0x8b0   :  { %2370 = vmatprep.mubr.f32.mxu1 %v1148_v7 }
 0x952   :  { %v1233_v26 = vpop.f32.mrb[10].mxu1 }
 0x953   :  { %v1237_v22 = vadd.f32 %v1233_v26, %v226_v0  ;;  %v2287_v29 = vpop.f32.mrb[11].mxu1 }
 0x955   :  { %2321 = vmatmul.mubr.f32.vlgmr.msra.gmra.mrb[34].mxu0 %v1237_v22  ;;  %2371 = vmatmul.mubr.f32.gmra.mrb[22].mxu1 %v1237_v22 }
 0x972   :  { %v2357_v49 = vpop.f32.mrb[12].mxu1 }
 0x973   :  { %v1494_v16 = vadd.f32 %v2357_v49, %v170_v39  ;;  %v1434_v30 = vpop.f32.mrb[13].mxu1 }
 0x974   :  { %v1493_v31 = vadd.f32 %v1434_v30, %v164_v43 }
 0x975   :  { %1507 = vmax.xlane.f32.xlu0 %v1494_v16 }
 0x976   :  { %v2360_v35 = vpop.f32.mrb[14].mxu1 }
 0x977   :  { %v1496_v37 = vadd.f32 %v2360_v35, %v182_v34  ;;  %v1444_v40 = vpop.f32.mrb[15].mxu1 }
 0x978   :  { %v1495_v41 = vadd.f32 %v1444_v40, %v176_v15 }
 0x979   :  { %1505 = vmax.xlane.f32.xlu0 %v1493_v31  ;;  %1511 = vmax.xlane.f32.xlu1 %v1496_v37 }
 0x97a   :  { %v2363_v45 = vpop.f32.mrb[16].mxu1 }
 0x97b   :  { %v1498_v55 = vadd.f32 %v2363_v45, %v194_v50  ;;  %v1454_v42 = vpop.f32.mrb[17].mxu1 }
 0x97c   :  { %v1497_v44 = vadd.f32 %v1454_v42, %v188_v48 }
 0x97d   :  { %1509 = vmax.xlane.f32.xlu1 %v1495_v41 }
 0x97e   :  { %1513 = vmax.xlane.f32.xlu0 %v1497_v44  ;;  %v2366_v51 = vpop.f32.mrb[18].mxu1 }
 0x97f   :  { %v1500_v11 = vadd.f32 %v2366_v51, %v206_v6  ;;  %v1464_v46 = vpop.f32.mrb[19].mxu1 }
 0x980   :  { %v1499_v47 = vadd.f32 %v1464_v46, %v200_v54 }
 0x981   :  { %1515 = vmax.xlane.f32.xlu1 %v1498_v55 }
 0x982   :  { %1517 = vmax.xlane.f32.xlu0 %v1499_v47  ;;  %v2369_v58 = vpop.f32.mrb[20].mxu1 }
 0x983   :  { %v1502_v3 = vadd.f32 %v2369_v58, %v218_v61  ;;  %v1474_v4 = vpop.f32.mrb[21].mxu1 }
 0x984   :  { %v1501_v7 = vadd.f32 %v1474_v4, %v212_v52 }
 0x985   :  { %1519 = vmax.xlane.f32.xlu1 %v1500_v11 }
 0x986   :  { %1521 = vmax.xlane.f32.xlu0 %v1501_v7 }
 0x989   :  { %1523 = vmax.xlane.f32.xlu1 %v1502_v3 }
 0xa02   :  { %v1508_v2 = vpop.xlane.xlu0 %1507 }
 0xa03   :  { %v3379_v32 = vsub.f32 %v1494_v16, %v1508_v2 }
 0xa05   :  { %v1543_v10 = vmul.f32 1.442695, %v3379_v32 }
 0xa06   :  { %v1512_v8 = vpop.xlane.xlu1 %1511  ;;  %v1506_v24 = vpop.xlane.xlu0 %1505 }
 0xa07   :  { %v3381_v36 = vsub.f32 %v1493_v31, %v1506_v24  ;;  %v3384_v13 = vsub.f32 %v1496_v37, %v1512_v8  ;;  %2701 = vpow2.f32 %v1543_v10 }
 0xa09   :  { %v1541_v53 = vmul.f32 1.442695, %v3381_v36  ;;  %v1547_v38 = vmul.f32 1.442695, %v3384_v13 }
 0xa0a   :  { %v1510_v20 = vpop.xlane.xlu1 %1509 }
 0xa0b   :  { %v1514_v12 = vpop.xlane.xlu0 %1513  ;;  %v3387_v56 = vsub.f32 %v1495_v41, %v1510_v20  ;;  %2703 = vpow2.f32 %v1541_v53 }
 0xa0c   :  { %v3390_v60 = vsub.f32 %v1497_v44, %v1514_v12  ;;  %2705 = vpow2.f32 %v1547_v38 }
 0xa0d   :  { %v1545_v1 = vmul.f32 1.442695, %v3387_v56 }
 0xa0e   :  { %v1516_v28 = vpop.xlane.xlu1 %1515  ;;  %v1549_v23 = vmul.f32 1.442695, %v3390_v60 }
 0xa0f   :  { %v3392_v62 = vsub.f32 %v1498_v55, %v1516_v28  ;;  %v1518_v63 = vpop.xlane.xlu0 %1517  ;;  %2707 = vpow2.f32 %v1545_v1 }
 0xa10   :  { %v3403_v29 = vsub.f32 %v1499_v47, %v1518_v63 }
 0xa11   :  { %v1551_v25 = vmul.f32 1.442695, %v3392_v62  ;;  %v2702_v30 = vpop.eup %2701 }
 0xa12   :  { %v1520_v59 = vpop.xlane.xlu1 %1519  ;;  %v1553_v49 = vmul.f32 1.442695, %v3403_v29 }
 0xa13   :  { %v3401_v0 = vsub.f32 %v1500_v11, %v1520_v59  ;;  %v1522_v33 = vpop.xlane.xlu0 %1521  ;;  %2709 = vpow2.f32 %v1551_v25 }
 0xa14   :  { %2711 = vpow2.f32 %v1549_v23  ;;  %v3409_v16 = vsub.f32 %v1501_v7, %v1522_v33 }
 0xa15   :  { %v1555_v57 = vmul.f32 1.442695, %v3401_v0  ;;  %v2704_v31 = vpop.eup %2703 }
 0xa16   :  { %v1524_v21 = vpop.xlane.xlu1 %1523  ;;  %v1557_v15 = vmul.f32 1.442695, %v3409_v16  ;;  %v2706_v35 = vpop.eup %2705 }
 0xa17   :  { %v3406_v18 = vsub.f32 %v1502_v3, %v1524_v21  ;;  %2713 = vpow2.f32 %v1555_v57 }
 0xa18   :  { %2715 = vpow2.f32 %v1553_v49 }
 0xa19   :  { %v1559_v34 = vmul.f32 1.442695, %v3406_v18  ;;  %v2708_v37 = vpop.eup %2707 }
 0xa1b   :  { %2717 = vpow2.f32 %v1559_v34 }
 0xa1c   :  { %2719 = vpow2.f32 %v1557_v15 }
 0xa1d   :  { %v2710_v40 = vpop.eup %2709 }
 0xa1e   :  { %v2712_v41 = vpop.eup %2711 }
 0xa21   :  { %v2714_v50 = vpop.eup %2713 }
 0xa22   :  { %v2716_v48 = vpop.eup %2715 }
 0xa25   :  { %v2718_v45 = vpop.eup %2717 }
 0xa26   :  { %v2720_v55 = vpop.eup %2719 }
 0xa28   :  { %v1322_v26 = vpop.f32.mrb[34].mxu0  ;;  %v2372_v22 = vpop.f32.mrb[22].mxu1 }
 0xa29   :  { %v1326_v27 = vadd.f32 %v1322_v26, %v232_v19  ;;  %v1504_v14 = vadd.f32 %v2372_v22, %v230_v9  ;;  %v2322_v39 = vpop.f32.mrb[35].mxu0  ;;  %v1484_v17 = vpop.f32.mrb[23].mxu1 }
 0xa2a   :  { %v1503_v43 = vadd.f32 %v1484_v17, %v224_v5 }
 0xa2b   :  { %1640 = vst [vmem:[#allocation5] sm:$0xff] %v1326_v27  ;;  %1527 = vmax.xlane.f32.xlu1 %v1504_v14 }
 0xa2c   :  { %1525 = vmax.xlane.f32.xlu0 %v1503_v43 }
 0xa2f   :  { %1567 = vadd.xlane.f32.xlu1 %v2702_v30 }
 0xa30   :  { %1565 = vadd.xlane.f32.xlu0 %v2704_v31 }
 0xa33   :  { %1571 = vadd.xlane.f32.xlu1 %v2706_v35 }
 0xa34   :  { %1569 = vadd.xlane.f32.xlu0 %v2708_v37 }
 0xa37   :  { %1575 = vadd.xlane.f32.xlu1 %v2710_v40 }
 0xa38   :  { %1573 = vadd.xlane.f32.xlu0 %v2712_v41 }
 0xa3b   :  { %1579 = vadd.xlane.f32.xlu1 %v2714_v50 }
 0xa3c   :  { %1577 = vadd.xlane.f32.xlu0 %v2716_v48 }
 0xa3f   :  { %1583 = vadd.xlane.f32.xlu1 %v2718_v45 }
 0xa40   :  { %1581 = vadd.xlane.f32.xlu0 %v2720_v55 }
 0xab8   :  { %v1528_v42 = vpop.xlane.xlu1 %1527 }
 0xab9   :  { %v3413_v44 = vsub.f32 %v1504_v14, %v1528_v42  ;;  %v1526_v6 = vpop.xlane.xlu0 %1525 }
 0xaba   :  { %v3415_v54 = vsub.f32 %v1503_v43, %v1526_v6 }
 0xabb   :  { %v1563_v51 = vmul.f32 1.442695, %v3413_v44 }
 0xabc   :  { %v1561_v11 = vmul.f32 1.442695, %v3415_v54  ;;  %v1568_v46 = vpop.xlane.xlu1 %1567 }
 0xabd   :  { %2721 = vpow2.f32 %v1563_v51  ;;  %v1566_v47 = vpop.xlane.xlu0 %1565 }
 0xabe   :  { %2723 = vpow2.f32 %v1561_v11 }
 0xabf   :  { %2725 = vlog2.f32 %v1568_v46 }
 0xac0   :  { %2727 = vlog2.f32 %v1566_v47  ;;  %v1572_v61 = vpop.xlane.xlu1 %1571 }
 0xac1   :  { %2729 = vlog2.f32 %v1572_v61  ;;  %v1570_v52 = vpop.xlane.xlu0 %1569 }
 0xac2   :  { %2731 = vlog2.f32 %v1570_v52 }
 0xac4   :  { %v1576_v58 = vpop.xlane.xlu1 %1575 }
 0xac5   :  { %2733 = vlog2.f32 %v1576_v58  ;;  %v1574_v3 = vpop.xlane.xlu0 %1573 }
 0xac6   :  { %2735 = vlog2.f32 %v1574_v3 }
 0xac7   :  { %v2722_v4 = vpop.eup %2721 }
 0xac8   :  { %v2724_v7 = vpop.eup %2723  ;;  %1587 = vadd.xlane.f32.xlu1 %v2722_v4  ;;  %v1580_v8 = vpop.xlane.xlu1 %1579 }
 0xac9   :  { %v2726_v2 = vpop.eup %2725  ;;  %2737 = vlog2.f32 %v1580_v8  ;;  %1585 = vadd.xlane.f32.xlu0 %v2724_v7  ;;  %v1578_v20 = vpop.xlane.xlu0 %1577 }
 0xaca   :  { %v2728_v24 = vpop.eup %2727  ;;  %v1592_v28 = vmul.f32 0.6931472, %v2726_v2  ;;  %2739 = vlog2.f32 %v1578_v20 }
 0xacb   :  { %v2730_v12 = vpop.eup %2729  ;;  %v1590_v10 = vmul.f32 0.6931472, %v2728_v24 }
 0xacc   :  { %v2732_v53 = vpop.eup %2731  ;;  %v1614_v59 = vsub.f32 %v3379_v32, %v1592_v28  ;;  %v1596_v38 = vmul.f32 0.6931472, %v2730_v12  ;;  %v1584_v63 = vpop.xlane.xlu1 %1583 }
 0xacd   :  { %v1613_v1 = vsub.f32 %v3381_v36, %v1590_v10  ;;  %v1594_v5 = vmul.f32 0.6931472, %v2732_v53  ;;  %2741 = vlog2.f32 %v1584_v63  ;;  %v1582_v9 = vpop.xlane.xlu0 %1581 }
 0xace   :  { %1626 = vst [vmem:[%s3485_s6 + $0x8] sm:$0xff] %v1614_v59  ;;  %v1616_v19 = vsub.f32 %v3384_v13, %v1596_v38  ;;  %2743 = vlog2.f32 %v1582_v9 }
 0xacf   :  { %v2734_v21 = vpop.eup %2733  ;;  %1625 = vst [vmem:[%s3485_s6] sm:$0xff] %v1613_v1  ;;  %v1615_v32 = vsub.f32 %v3387_v56, %v1594_v5 }
 0xad0   :  { %v2736_v23 = vpop.eup %2735  ;;  %1628 = vst [vmem:[%s3485_s6 + $0x18] sm:$0xff] %v1616_v19  ;;  %v1600_v36 = vmul.f32 0.6931472, %v2734_v21 }
 0xad1   :  { %1627 = vst [vmem:[%s3485_s6 + $0x10] sm:$0xff] %v1615_v32  ;;  %v1598_v25 = vmul.f32 0.6931472, %v2736_v23 }
 0xad2   :  { %v1618_v13 = vsub.f32 %v3392_v62, %v1600_v36 }
 0xad3   :  { %v2738_v26 = vpop.eup %2737  ;;  %v1617_v22 = vsub.f32 %v3390_v60, %v1598_v25 }
 0xad4   :  { %v2740_v27 = vpop.eup %2739  ;;  %1630 = vst [vmem:[%s3485_s6 + $0x28] sm:$0xff] %v1618_v13  ;;  %v1604_v56 = vmul.f32 0.6931472, %v2738_v26 }
 0xad5   :  { %1629 = vst [vmem:[%s3485_s6 + $0x20] sm:$0xff] %v1617_v22  ;;  %v1602_v14 = vmul.f32 0.6931472, %v2740_v27 }
 0xad6   :  { %v1620_v39 = vsub.f32 %v3401_v0, %v1604_v56 }
 0xad7   :  { %v2742_v17 = vpop.eup %2741  ;;  %v1619_v33 = vsub.f32 %v3403_v29, %v1602_v14 }
 0xad8   :  { %v2744_v62 = vpop.eup %2743  ;;  %1632 = vst [vmem:[%s3485_s6 + $0x38] sm:$0xff] %v1620_v39  ;;  %v1608_v60 = vmul.f32 0.6931472, %v2742_v17 }
 0xad9   :  { %1631 = vst [vmem:[%s3485_s6 + $0x30] sm:$0xff] %v1619_v33  ;;  %v1606_v43 = vmul.f32 0.6931472, %v2744_v62 }
 0xada   :  { %v1622_v57 = vsub.f32 %v3406_v18, %v1608_v60 }
 0xadb   :  { %v1621_v49 = vsub.f32 %v3409_v16, %v1606_v43 }
 0xadc   :  { %1634 = vst [vmem:[%s3485_s6 + $0x48] sm:$0xff] %v1622_v57 }
 0xadd   :  { %1633 = vst [vmem:[%s3485_s6 + $0x40] sm:$0xff] %v1621_v49 }
 0xade   :  { %2760 = shalt.err (!%p2757_p4)
}
 0xadf   :  { %s2761_s2 = scalar_lea.hbm %s3486_s7, 128 }
 0xae0   :  { %p2762_p5 = scmp.ne.s32.totalorder %s3486_s7, %s2761_s2  ;;  %p2765_p6 = scmp.lt.u32.totalorder %s2761_s2, %s3486_s7 }
 0xae2   :  { %p2767_p7 = pnand %p2765_p6, %p2762_p5 }
 0xae4   :  { %2770 = shalt.err (!%p2767_p7)
}
 0xae5   :  { %1652 = dma.vmem_to_hbm [thread:$0]  %s1650_s19, 128, %s3486_s7, [#allocation6]  }
 0xb55   :  { %v1588_v0 = vpop.xlane.xlu1 %1587 }
 0xb56   :  { %2745 = vlog2.f32 %v1588_v0  ;;  %v1586_v29 = vpop.xlane.xlu0 %1585 }
 0xb57   :  { %2747 = vlog2.f32 %v1586_v29 }
 0xb60   :  { %v2746_v18 = vpop.eup %2745 }
 0xb61   :  { %v2748_v16 = vpop.eup %2747  ;;  %v1612_v30 = vmul.f32 0.6931472, %v2746_v18 }
 0xb62   :  { %v1610_v31 = vmul.f32 0.6931472, %v2748_v16 }
 0xb63   :  { %v1624_v34 = vsub.f32 %v3413_v44, %v1612_v30 }
 0xb64   :  { %v1623_v15 = vsub.f32 %v3415_v54, %v1610_v31 }
 0xb65   :  { %1636 = vst [vmem:[%s3485_s6 + $0x58] sm:$0xff] %v1624_v34 }
 0xb66   :  { %1635 = vst [vmem:[%s3485_s6 + $0x50] sm:$0xff] %v1623_v15 }
 0xb67   :  { %2771 = dma.done.wait [#allocation6], 128  }
 0xb68   :  { %2772 = vsyncadd [#allocation6], 4294967168 }
 0xb69   :  { %1658 = vsyncpa [#allocation6], 1 }

</bundles_post_ra>
